<compile_context>
chip_gen: v7x
topology: tpu7x:2x2x1
jax: 0.10.0
libtpu: 0.0.40
codegen_flags: <defaults>
</compile_context>

<pallas_src>
import functools

import jax
import jax.numpy as jnp
from jax.experimental import pallas as pl
from jax.experimental.pallas import tpu as pltpu


def _round_up(x, m):
    return (x + m - 1) // m * m


def _pick_lane_tile(total, max_tile=8192, quantum=128):
    """Largest multiple of `quantum` <= max_tile that divides `total` (total % quantum == 0)."""
    best = quantum
    t = quantum
    cap = min(total, max_tile)
    while t <= cap:
        if total % t == 0:
            best = t
        t += quantum
    return best


def _vmem_limit_bytes():
    """Chip-derived VMEM cap with ~20% headroom (v5e/v6e: 128 MiB, v7x: 64 MiB physical)."""
    try:
        cap = pltpu.get_tpu_info().vmem_capacity_bytes
    except Exception:
        cap = 64 << 20
    return int(cap * 4 // 5)


# ---------------------------------------------------------------------------
# Kernel 1: direct conv (in-kernel tap gather, padded-grid lanes) + BN stat partials
# ---------------------------------------------------------------------------
def pallas_conv3d_bn_stats(x_flat, w_taps, mask, tap_offsets, Mp):
    """x_flat: [N, Cin, P] f32  (spatially zero-padded, flattened, lane-padded)
       w_taps: [T, Cout, Cin] f32  (T = k^3 taps, row-major (dz, dy, dx))
       mask:   [1, Mp] f32  (1.0 on lanes that are real conv outputs on the padded grid)
       Returns (conv [N, Cout, Mp] bf16, sum [N, Cout, 1] f32, sumsq [N, Cout, 1] f32)."""
    N, Cin, P = x_flat.shape
    T, Cout, _ = w_taps.shape

    def kernel(x_ref, w_ref, m_ref, conv_ref, sum_ref, sq_ref):
        # x_ref: (Cin, P) f32, w_ref: (T, Cout, Cin) f32, m_ref: (1, Mp) f32
        # conv_ref: (Cout, Mp) bf16, sum_ref/sq_ref: (Cout, 1) f32
        acc = jnp.zeros((Cout, Mp), jnp.float32)
        for t, off in enumerate(tap_offsets):
            # static lane-offset gather of one conv tap (in-VMEM, no HBM inflation)
            slab = x_ref[:, off:off + Mp]                                 # (Cin, Mp)
            acc = acc + jnp.dot(w_ref[t], slab,
                                preferred_element_type=jnp.float32)      # (Cout, Mp)
        masked = acc * m_ref[...]                                         # zero non-output lanes
        conv_ref[...] = masked.astype(conv_ref.dtype)                     # bf16 intermediate
        # per-sample, per-channel BatchNorm batch-stat partials (from the f32 accumulator)
        sum_ref[...] = jnp.sum(masked, axis=-1, keepdims=True)
        sq_ref[...] = jnp.sum(masked * masked, axis=-1, keepdims=True)

    return pl.pallas_call(
        kernel,
        out_shape=(
            jax.ShapeDtypeStruct((N, Cout, Mp), jnp.bfloat16),
            jax.ShapeDtypeStruct((N, Cout, 1), jnp.float32),
            jax.ShapeDtypeStruct((N, Cout, 1), jnp.float32),
        ),
        grid=(N,),
        in_specs=[
            pl.BlockSpec((pl.Squeezed(), Cin, P), lambda n: (n, 0, 0)),
            pl.BlockSpec((T, Cout, Cin), lambda n: (0, 0, 0)),     # resident, fetched once
            pl.BlockSpec((1, Mp), lambda n: (0, 0)),               # resident, fetched once
        ],
        out_specs=(
            pl.BlockSpec((pl.Squeezed(), Cout, Mp), lambda n: (n, 0, 0)),
            pl.BlockSpec((pl.Squeezed(), Cout, 1), lambda n: (n, 0, 0)),
            pl.BlockSpec((pl.Squeezed(), Cout, 1), lambda n: (n, 0, 0)),
        ),
        compiler_params=pltpu.CompilerParams(
            dimension_semantics=("parallel",),        # batch axis megacore-shardable
            vmem_limit_bytes=_vmem_limit_bytes(),
        ),
    )(x_flat, w_taps, mask)


# ---------------------------------------------------------------------------
# Kernel 2: fused BN affine-normalize + ReLU over a lane-dense 2-D [N*Cout, Mp] view
# ---------------------------------------------------------------------------
def pallas_bn_relu(conv_flat, scale_rows, shift_rows, lane_tile):
    R, Mp = conv_flat.shape

    def kernel(x_ref, scale_ref, shift_ref, o_ref):
        x = x_ref[...].astype(jnp.float32)                 # bf16 -> f32 compute
        y = x * scale_ref[...] + shift_ref[...]
        o_ref[...] = jnp.maximum(y, 0.0)

    return pl.pallas_call(
        kernel,
        out_shape=jax.ShapeDtypeStruct((R, Mp), jnp.float32),
        grid=(Mp // lane_tile,),
        in_specs=[
            pl.BlockSpec((R, lane_tile), lambda j: (0, j)),
            pl.BlockSpec((R, 1), lambda j: (0, 0)),
            pl.BlockSpec((R, 1), lambda j: (0, 0)),
        ],
        out_specs=pl.BlockSpec((R, lane_tile), lambda j: (0, j)),
        compiler_params=pltpu.CompilerParams(
            dimension_semantics=("parallel",),
            vmem_limit_bytes=_vmem_limit_bytes(),
        ),
    )(conv_flat, scale_rows, shift_rows)


# ---------------------------------------------------------------------------
# Full BasicConv3d forward (Conv3d bias=False, groups=1 -> BN3d train-mode -> ReLU)
# ---------------------------------------------------------------------------
@functools.partial(jax.jit,
                   static_argnames=("ksize", "stride", "padding", "dilation", "eps"))
def basic_conv3d_forward(x, conv_w, gamma, beta, *, ksize, stride=1, padding=0,
                         dilation=1, eps=1e-5):
    """x: [N, Cin, D, H, W], conv_w: [Cout, Cin, k, k, k], gamma/beta: [Cout].
    Returns [N, Cout, Do, Ho, Wo] float32 (training-mode BatchNorm normalization)."""
    N, Cin, D, H, W = x.shape
    Cout = conv_w.shape[0]
    k, s, p, dil = ksize, stride, padding, dilation
    keff = dil * (k - 1) + 1
    Do = (D + 2 * p - keff) // s + 1
    Ho = (H + 2 * p - keff) // s + 1
    Wo = (W + 2 * p - keff) // s + 1
    Dp, Hp, Wp = D + 2 * p, H + 2 * p, W + 2 * p

    # Padded-grid lane geometry: kernel 1 evaluates the conv at every padded-grid origin p;
    # origin (do*s, ho*s, wo*s) is the real output (do, ho, wo). Mp covers the last real origin.
    L_need = ((Do - 1) * s) * Hp * Wp + ((Ho - 1) * s) * Wp + (Wo - 1) * s + 1
    Mp = _round_up(L_need, 128)
    tap_offsets = tuple(dz * dil * Hp * Wp + dy * dil * Wp + dx * dil
                        for dz in range(k) for dy in range(k) for dx in range(k))
    P_alloc = _round_up(Mp + max(tap_offsets), 128)

    # Spatial zero-pad + flatten + lane pad (tiny; replaces the 27x im2col inflation).
    xp = jnp.pad(x.astype(jnp.float32), ((0, 0), (0, 0), (p, p), (p, p), (p, p)))
    x_flat = xp.reshape(N, Cin, Dp * Hp * Wp)
    x_flat = jnp.pad(x_flat, ((0, 0), (0, 0), (0, P_alloc - Dp * Hp * Wp)))

    # Per-tap (Cout, Cin) weight matrices, tap order matching tap_offsets.
    w_taps = conv_w.reshape(Cout, Cin, k * k * k).transpose(2, 0, 1).astype(jnp.float32)

    # Validity mask over padded-grid lanes (computed once in JAX, resident in VMEM).
    lanes = jnp.arange(Mp, dtype=jnp.int32)
    w_ = lanes % Wp
    h_ = (lanes // Wp) % Hp
    d_ = lanes // (Hp * Wp)
    valid = ((w_ % s == 0) & (w_ // s < Wo)
             & (h_ % s == 0) & (h_ // s < Ho)
             & (d_ % s == 0) & (d_ // s < Do))
    mask = valid.astype(jnp.float32).reshape(1, Mp)

    # 1) conv + fused BN batch-stat partials
    conv_out, psum, psq = pallas_conv3d_bn_stats(x_flat, w_taps, mask, tap_offsets, Mp)

    # Fold per-sample partials -> per-channel scale/shift (biased var, PyTorch train-mode).
    count = N * Do * Ho * Wo
    ch_sum = psum.sum(axis=0)[:, 0]
    ch_sq = psq.sum(axis=0)[:, 0]
    mean = ch_sum / count
    var = jnp.maximum(ch_sq / count - mean * mean, 0.0)
    # TODO(synk): switch to a shifted/Welford fold for very large N*Do*Ho*Wo to avoid
    # E[x^2]-E[x]^2 cancellation.
    scale = gamma / jnp.sqrt(var + eps)
    shift = beta - mean * scale

    # 2) fused normalize + ReLU on the lane-dense flattened view
    R = N * Cout
    conv_flat = conv_out.reshape(R, Mp)
    scale_rows = jnp.tile(scale, N).reshape(R, 1).astype(jnp.float32)
    shift_rows = jnp.tile(shift, N).reshape(R, 1).astype(jnp.float32)
    lane_tile = _pick_lane_tile(Mp)
    y = pallas_bn_relu(conv_flat, scale_rows, shift_rows, lane_tile)

    # Extract the real (strided) outputs from the padded-grid layout — no transpose pass.
    Lfull = Dp * Hp * Wp
    y3 = y.reshape(N, Cout, Mp)
    if Mp >= Lfull:
        yv = y3[:, :, :Lfull]
    else:
        yv = jnp.pad(y3, ((0, 0), (0, 0), (0, Lfull - Mp)))
    yv = yv.reshape(N, Cout, Dp, Hp, Wp)
    return yv[:, :,
              : (Do - 1) * s + 1 : s,
              : (Ho - 1) * s + 1 : s,
              : (Wo - 1) * s + 1 : s]


# ---------------------------------------------------------------------------
# Pure-JAX reference (sanity check)
# ---------------------------------------------------------------------------
def reference_forward(x, conv_w, gamma, beta, *, stride, padding, dilation=1, eps=1e-5):
    out = jax.lax.conv_general_dilated(
        x, conv_w,
        window_strides=(stride,) * 3,
        padding=[(padding, padding)] * 3,
        rhs_dilation=(dilation,) * 3,
        dimension_numbers=("NCDHW", "OIDHW", "NCDHW"),
        preferred_element_type=jnp.float32,
    )
    mean = jnp.mean(out, axis=(0, 2, 3, 4), keepdims=True)
    var = jnp.mean((out - mean) ** 2, axis=(0, 2, 3, 4), keepdims=True)
    out = (out - mean) / jnp.sqrt(var + eps) * gamma.reshape(1, -1, 1, 1, 1) \
          + beta.reshape(1, -1, 1, 1, 1)
    return jnp.maximum(out, 0.0)


# ---------------------------------------------------------------------------
if __name__ == "__main__":
    # BasicConv3d(in_planes=4, out_planes=8, kernel_size=3, stride=1, padding=1,
    #             relu=True, bn=True, bias=False)
    N, Cin, D, H, W = 2, 4, 8, 8, 8
    Cout, K = 8, 3
    stride, padding = 1, 1

    key = jax.random.PRNGKey(0)
    kx, kw = jax.random.split(key)
    x = jax.random.normal(kx, (N, Cin, D, H, W), dtype=jnp.float32)
    conv_w = jax.random.normal(kw, (Cout, Cin, K, K, K), dtype=jnp.float32) * 0.1
    gamma = jnp.ones((Cout,), dtype=jnp.float32)    # PyTorch BatchNorm3d default affine init
    beta = jnp.zeros((Cout,), dtype=jnp.float32)

    y = basic_conv3d_forward(x, conv_w, gamma, beta,
                             ksize=K, stride=stride, padding=padding)
    y = jax.block_until_ready(y)
    assert y.shape == (N, Cout, D, H, W), y.shape

    y_ref = reference_forward(x, conv_w, gamma, beta, stride=stride, padding=padding)
    max_err = float(jnp.max(jnp.abs(y - y_ref)))
    assert jnp.allclose(y, y_ref, rtol=3e-2, atol=3e-2), f"mismatch vs reference, max err {max_err}"

    print("KERNEL_OK")
</pallas_src>

<mosaic_0001>
module attributes {stable_mosaic.version = 11 : i64} {
  func.func @kernel(%arg0: i32, %arg1: memref<1x4x1152xf32, #tpu.memory_space<vmem>>, %arg2: memref<27x8x4xf32, #tpu.memory_space<vmem>>, %arg3: memref<1x896xf32, #tpu.memory_space<vmem>>, %arg4: memref<1x8x896xbf16, #tpu.memory_space<vmem>>, %arg5: memref<1x8x1xf32, #tpu.memory_space<vmem>>, %arg6: memref<1x8x1xf32, #tpu.memory_space<vmem>>) attributes {dimension_semantics = [#tpu.dimension_semantics<parallel>], iteration_bounds = array<i64: 2>, scalar_prefetch = 0 : i64, scratch_operands = 0 : i64, tpu.core_type = #tpu.core_type<tc>, window_params = [{transform_indices = @transform_0, window_bounds = array<i64: 1, 4, 1152>}, {pipeline_mode = #tpu.pipeline_mode<synchronous>, transform_indices = @transform_1, window_bounds = array<i64: 27, 8, 4>}, {pipeline_mode = #tpu.pipeline_mode<synchronous>, transform_indices = @transform_2, window_bounds = array<i64: 1, 896>}, {transform_indices = @transform_3, window_bounds = array<i64: 1, 8, 896>}, {transform_indices = @transform_4, window_bounds = array<i64: 1, 8, 1>}, {transform_indices = @transform_5, window_bounds = array<i64: 1, 8, 1>}]} {
    %cst = arith.constant 0.000000e+00 : f32
    %0 = vector.broadcast %cst : f32 to vector<8x896xf32>
    %c0 = arith.constant 0 : index
    %c0_0 = arith.constant 0 : index
    %c0_1 = arith.constant 0 : index
    %1 = vector.load %arg1[%c0, %c0_0, %c0_1] : memref<1x4x1152xf32, #tpu.memory_space<vmem>>, vector<1x4x896xf32>
    %2 = vector.shape_cast %1 : vector<1x4x896xf32> to vector<4x896xf32>
    %c0_2 = arith.constant 0 : index
    %c0_3 = arith.constant 0 : index
    %c0_4 = arith.constant 0 : index
    %3 = vector.load %arg2[%c0_2, %c0_3, %c0_4] : memref<27x8x4xf32, #tpu.memory_space<vmem>>, vector<1x8x4xf32>
    %4 = vector.shape_cast %3 : vector<1x8x4xf32> to vector<8x4xf32>
    %cst_5 = arith.constant dense<0.000000e+00> : vector<8x896xf32>
    %5 = tpu.matmul %4, %2, %cst_5 {dimension_numbers = #tpu.dot_dimension_numbers<[1], [0], [0], [1], [0, 0, 1, 1], [], []>} : vector<8x4xf32>, vector<4x896xf32>, vector<8x896xf32> -> vector<8x896xf32>
    %6 = arith.addf %0, %5 : vector<8x896xf32>
    %c0_6 = arith.constant 0 : index
    %c0_7 = arith.constant 0 : index
    %c1 = arith.constant 1 : index
    %7 = vector.load %arg1[%c0_6, %c0_7, %c1] : memref<1x4x1152xf32, #tpu.memory_space<vmem>>, vector<1x4x896xf32>
    %8 = vector.shape_cast %7 : vector<1x4x896xf32> to vector<4x896xf32>
    %c1_8 = arith.constant 1 : index
    %c0_9 = arith.constant 0 : index
    %c0_10 = arith.constant 0 : index
    %9 = vector.load %arg2[%c1_8, %c0_9, %c0_10] : memref<27x8x4xf32, #tpu.memory_space<vmem>>, vector<1x8x4xf32>
    %10 = vector.shape_cast %9 : vector<1x8x4xf32> to vector<8x4xf32>
    %cst_11 = arith.constant dense<0.000000e+00> : vector<8x896xf32>
    %11 = tpu.matmul %10, %8, %cst_11 {dimension_numbers = #tpu.dot_dimension_numbers<[1], [0], [0], [1], [0, 0, 1, 1], [], []>} : vector<8x4xf32>, vector<4x896xf32>, vector<8x896xf32> -> vector<8x896xf32>
    %12 = arith.addf %6, %11 : vector<8x896xf32>
    %c0_12 = arith.constant 0 : index
    %c0_13 = arith.constant 0 : index
    %c2 = arith.constant 2 : index
    %13 = vector.load %arg1[%c0_12, %c0_13, %c2] : memref<1x4x1152xf32, #tpu.memory_space<vmem>>, vector<1x4x896xf32>
    %14 = vector.shape_cast %13 : vector<1x4x896xf32> to vector<4x896xf32>
    %c2_14 = arith.constant 2 : index
    %c0_15 = arith.constant 0 : index
    %c0_16 = arith.constant 0 : index
    %15 = vector.load %arg2[%c2_14, %c0_15, %c0_16] : memref<27x8x4xf32, #tpu.memory_space<vmem>>, vector<1x8x4xf32>
    %16 = vector.shape_cast %15 : vector<1x8x4xf32> to vector<8x4xf32>
    %cst_17 = arith.constant dense<0.000000e+00> : vector<8x896xf32>
    %17 = tpu.matmul %16, %14, %cst_17 {dimension_numbers = #tpu.dot_dimension_numbers<[1], [0], [0], [1], [0, 0, 1, 1], [], []>} : vector<8x4xf32>, vector<4x896xf32>, vector<8x896xf32> -> vector<8x896xf32>
    %18 = arith.addf %12, %17 : vector<8x896xf32>
    %c0_18 = arith.constant 0 : index
    %c0_19 = arith.constant 0 : index
    %c10 = arith.constant 10 : index
    %19 = vector.load %arg1[%c0_18, %c0_19, %c10] : memref<1x4x1152xf32, #tpu.memory_space<vmem>>, vector<1x4x896xf32>
    %20 = vector.shape_cast %19 : vector<1x4x896xf32> to vector<4x896xf32>
    %c3 = arith.constant 3 : index
    %c0_20 = arith.constant 0 : index
    %c0_21 = arith.constant 0 : index
    %21 = vector.load %arg2[%c3, %c0_20, %c0_21] : memref<27x8x4xf32, #tpu.memory_space<vmem>>, vector<1x8x4xf32>
    %22 = vector.shape_cast %21 : vector<1x8x4xf32> to vector<8x4xf32>
    %cst_22 = arith.constant dense<0.000000e+00> : vector<8x896xf32>
    %23 = tpu.matmul %22, %20, %cst_22 {dimension_numbers = #tpu.dot_dimension_numbers<[1], [0], [0], [1], [0, 0, 1, 1], [], []>} : vector<8x4xf32>, vector<4x896xf32>, vector<8x896xf32> -> vector<8x896xf32>
    %24 = arith.addf %18, %23 : vector<8x896xf32>
    %c0_23 = arith.constant 0 : index
    %c0_24 = arith.constant 0 : index
    %c11 = arith.constant 11 : index
    %25 = vector.load %arg1[%c0_23, %c0_24, %c11] : memref<1x4x1152xf32, #tpu.memory_space<vmem>>, vector<1x4x896xf32>
    %26 = vector.shape_cast %25 : vector<1x4x896xf32> to vector<4x896xf32>
    %c4 = arith.constant 4 : index
    %c0_25 = arith.constant 0 : index
    %c0_26 = arith.constant 0 : index
    %27 = vector.load %arg2[%c4, %c0_25, %c0_26] : memref<27x8x4xf32, #tpu.memory_space<vmem>>, vector<1x8x4xf32>
    %28 = vector.shape_cast %27 : vector<1x8x4xf32> to vector<8x4xf32>
    %cst_27 = arith.constant dense<0.000000e+00> : vector<8x896xf32>
    %29 = tpu.matmul %28, %26, %cst_27 {dimension_numbers = #tpu.dot_dimension_numbers<[1], [0], [0], [1], [0, 0, 1, 1], [], []>} : vector<8x4xf32>, vector<4x896xf32>, vector<8x896xf32> -> vector<8x896xf32>
    %30 = arith.addf %24, %29 : vector<8x896xf32>
    %c0_28 = arith.constant 0 : index
    %c0_29 = arith.constant 0 : index
    %c12 = arith.constant 12 : index
    %31 = vector.load %arg1[%c0_28, %c0_29, %c12] : memref<1x4x1152xf32, #tpu.memory_space<vmem>>, vector<1x4x896xf32>
    %32 = vector.shape_cast %31 : vector<1x4x896xf32> to vector<4x896xf32>
    %c5 = arith.constant 5 : index
    %c0_30 = arith.constant 0 : index
    %c0_31 = arith.constant 0 : index
    %33 = vector.load %arg2[%c5, %c0_30, %c0_31] : memref<27x8x4xf32, #tpu.memory_space<vmem>>, vector<1x8x4xf32>
    %34 = vector.shape_cast %33 : vector<1x8x4xf32> to vector<8x4xf32>
    %cst_32 = arith.constant dense<0.000000e+00> : vector<8x896xf32>
    %35 = tpu.matmul %34, %32, %cst_32 {dimension_numbers = #tpu.dot_dimension_numbers<[1], [0], [0], [1], [0, 0, 1, 1], [], []>} : vector<8x4xf32>, vector<4x896xf32>, vector<8x896xf32> -> vector<8x896xf32>
    %36 = arith.addf %30, %35 : vector<8x896xf32>
    %c0_33 = arith.constant 0 : index
    %c0_34 = arith.constant 0 : index
    %c20 = arith.constant 20 : index
    %37 = vector.load %arg1[%c0_33, %c0_34, %c20] : memref<1x4x1152xf32, #tpu.memory_space<vmem>>, vector<1x4x896xf32>
    %38 = vector.shape_cast %37 : vector<1x4x896xf32> to vector<4x896xf32>
    %c6 = arith.constant 6 : index
    %c0_35 = arith.constant 0 : index
    %c0_36 = arith.constant 0 : index
    %39 = vector.load %arg2[%c6, %c0_35, %c0_36] : memref<27x8x4xf32, #tpu.memory_space<vmem>>, vector<1x8x4xf32>
    %40 = vector.shape_cast %39 : vector<1x8x4xf32> to vector<8x4xf32>
    %cst_37 = arith.constant dense<0.000000e+00> : vector<8x896xf32>
    %41 = tpu.matmul %40, %38, %cst_37 {dimension_numbers = #tpu.dot_dimension_numbers<[1], [0], [0], [1], [0, 0, 1, 1], [], []>} : vector<8x4xf32>, vector<4x896xf32>, vector<8x896xf32> -> vector<8x896xf32>
    %42 = arith.addf %36, %41 : vector<8x896xf32>
    %c0_38 = arith.constant 0 : index
    %c0_39 = arith.constant 0 : index
    %c21 = arith.constant 21 : index
    %43 = vector.load %arg1[%c0_38, %c0_39, %c21] : memref<1x4x1152xf32, #tpu.memory_space<vmem>>, vector<1x4x896xf32>
    %44 = vector.shape_cast %43 : vector<1x4x896xf32> to vector<4x896xf32>
    %c7 = arith.constant 7 : index
    %c0_40 = arith.constant 0 : index
    %c0_41 = arith.constant 0 : index
    %45 = vector.load %arg2[%c7, %c0_40, %c0_41] : memref<27x8x4xf32, #tpu.memory_space<vmem>>, vector<1x8x4xf32>
    %46 = vector.shape_cast %45 : vector<1x8x4xf32> to vector<8x4xf32>
    %cst_42 = arith.constant dense<0.000000e+00> : vector<8x896xf32>
    %47 = tpu.matmul %46, %44, %cst_42 {dimension_numbers = #tpu.dot_dimension_numbers<[1], [0], [0], [1], [0, 0, 1, 1], [], []>} : vector<8x4xf32>, vector<4x896xf32>, vector<8x896xf32> -> vector<8x896xf32>
    %48 = arith.addf %42, %47 : vector<8x896xf32>
    %c0_43 = arith.constant 0 : index
    %c0_44 = arith.constant 0 : index
    %c22 = arith.constant 22 : index
    %49 = vector.load %arg1[%c0_43, %c0_44, %c22] : memref<1x4x1152xf32, #tpu.memory_space<vmem>>, vector<1x4x896xf32>
    %50 = vector.shape_cast %49 : vector<1x4x896xf32> to vector<4x896xf32>
    %c8 = arith.constant 8 : index
    %c0_45 = arith.constant 0 : index
    %c0_46 = arith.constant 0 : index
    %51 = vector.load %arg2[%c8, %c0_45, %c0_46] : memref<27x8x4xf32, #tpu.memory_space<vmem>>, vector<1x8x4xf32>
    %52 = vector.shape_cast %51 : vector<1x8x4xf32> to vector<8x4xf32>
    %cst_47 = arith.constant dense<0.000000e+00> : vector<8x896xf32>
    %53 = tpu.matmul %52, %50, %cst_47 {dimension_numbers = #tpu.dot_dimension_numbers<[1], [0], [0], [1], [0, 0, 1, 1], [], []>} : vector<8x4xf32>, vector<4x896xf32>, vector<8x896xf32> -> vector<8x896xf32>
    %54 = arith.addf %48, %53 : vector<8x896xf32>
    %c0_48 = arith.constant 0 : index
    %c0_49 = arith.constant 0 : index
    %c100 = arith.constant 100 : index
    %55 = vector.load %arg1[%c0_48, %c0_49, %c100] : memref<1x4x1152xf32, #tpu.memory_space<vmem>>, vector<1x4x896xf32>
    %56 = vector.shape_cast %55 : vector<1x4x896xf32> to vector<4x896xf32>
    %c9 = arith.constant 9 : index
    %c0_50 = arith.constant 0 : index
    %c0_51 = arith.constant 0 : index
    %57 = vector.load %arg2[%c9, %c0_50, %c0_51] : memref<27x8x4xf32, #tpu.memory_space<vmem>>, vector<1x8x4xf32>
    %58 = vector.shape_cast %57 : vector<1x8x4xf32> to vector<8x4xf32>
    %cst_52 = arith.constant dense<0.000000e+00> : vector<8x896xf32>
    %59 = tpu.matmul %58, %56, %cst_52 {dimension_numbers = #tpu.dot_dimension_numbers<[1], [0], [0], [1], [0, 0, 1, 1], [], []>} : vector<8x4xf32>, vector<4x896xf32>, vector<8x896xf32> -> vector<8x896xf32>
    %60 = arith.addf %54, %59 : vector<8x896xf32>
    %c0_53 = arith.constant 0 : index
    %c0_54 = arith.constant 0 : index
    %c101 = arith.constant 101 : index
    %61 = vector.load %arg1[%c0_53, %c0_54, %c101] : memref<1x4x1152xf32, #tpu.memory_space<vmem>>, vector<1x4x896xf32>
    %62 = vector.shape_cast %61 : vector<1x4x896xf32> to vector<4x896xf32>
    %c10_55 = arith.constant 10 : index
    %c0_56 = arith.constant 0 : index
    %c0_57 = arith.constant 0 : index
    %63 = vector.load %arg2[%c10_55, %c0_56, %c0_57] : memref<27x8x4xf32, #tpu.memory_space<vmem>>, vector<1x8x4xf32>
    %64 = vector.shape_cast %63 : vector<1x8x4xf32> to vector<8x4xf32>
    %cst_58 = arith.constant dense<0.000000e+00> : vector<8x896xf32>
    %65 = tpu.matmul %64, %62, %cst_58 {dimension_numbers = #tpu.dot_dimension_numbers<[1], [0], [0], [1], [0, 0, 1, 1], [], []>} : vector<8x4xf32>, vector<4x896xf32>, vector<8x896xf32> -> vector<8x896xf32>
    %66 = arith.addf %60, %65 : vector<8x896xf32>
    %c0_59 = arith.constant 0 : index
    %c0_60 = arith.constant 0 : index
    %c102 = arith.constant 102 : index
    %67 = vector.load %arg1[%c0_59, %c0_60, %c102] : memref<1x4x1152xf32, #tpu.memory_space<vmem>>, vector<1x4x896xf32>
    %68 = vector.shape_cast %67 : vector<1x4x896xf32> to vector<4x896xf32>
    %c11_61 = arith.constant 11 : index
    %c0_62 = arith.constant 0 : index
    %c0_63 = arith.constant 0 : index
    %69 = vector.load %arg2[%c11_61, %c0_62, %c0_63] : memref<27x8x4xf32, #tpu.memory_space<vmem>>, vector<1x8x4xf32>
    %70 = vector.shape_cast %69 : vector<1x8x4xf32> to vector<8x4xf32>
    %cst_64 = arith.constant dense<0.000000e+00> : vector<8x896xf32>
    %71 = tpu.matmul %70, %68, %cst_64 {dimension_numbers = #tpu.dot_dimension_numbers<[1], [0], [0], [1], [0, 0, 1, 1], [], []>} : vector<8x4xf32>, vector<4x896xf32>, vector<8x896xf32> -> vector<8x896xf32>
    %72 = arith.addf %66, %71 : vector<8x896xf32>
    %c0_65 = arith.constant 0 : index
    %c0_66 = arith.constant 0 : index
    %c110 = arith.constant 110 : index
    %73 = vector.load %arg1[%c0_65, %c0_66, %c110] : memref<1x4x1152xf32, #tpu.memory_space<vmem>>, vector<1x4x896xf32>
    %74 = vector.shape_cast %73 : vector<1x4x896xf32> to vector<4x896xf32>
    %c12_67 = arith.constant 12 : index
    %c0_68 = arith.constant 0 : index
    %c0_69 = arith.constant 0 : index
    %75 = vector.load %arg2[%c12_67, %c0_68, %c0_69] : memref<27x8x4xf32, #tpu.memory_space<vmem>>, vector<1x8x4xf32>
    %76 = vector.shape_cast %75 : vector<1x8x4xf32> to vector<8x4xf32>
    %cst_70 = arith.constant dense<0.000000e+00> : vector<8x896xf32>
    %77 = tpu.matmul %76, %74, %cst_70 {dimension_numbers = #tpu.dot_dimension_numbers<[1], [0], [0], [1], [0, 0, 1, 1], [], []>} : vector<8x4xf32>, vector<4x896xf32>, vector<8x896xf32> -> vector<8x896xf32>
    %78 = arith.addf %72, %77 : vector<8x896xf32>
    %c0_71 = arith.constant 0 : index
    %c0_72 = arith.constant 0 : index
    %c111 = arith.constant 111 : index
    %79 = vector.load %arg1[%c0_71, %c0_72, %c111] : memref<1x4x1152xf32, #tpu.memory_space<vmem>>, vector<1x4x896xf32>
    %80 = vector.shape_cast %79 : vector<1x4x896xf32> to vector<4x896xf32>
    %c13 = arith.constant 13 : index
    %c0_73 = arith.constant 0 : index
    %c0_74 = arith.constant 0 : index
    %81 = vector.load %arg2[%c13, %c0_73, %c0_74] : memref<27x8x4xf32, #tpu.memory_space<vmem>>, vector<1x8x4xf32>
    %82 = vector.shape_cast %81 : vector<1x8x4xf32> to vector<8x4xf32>
    %cst_75 = arith.constant dense<0.000000e+00> : vector<8x896xf32>
    %83 = tpu.matmul %82, %80, %cst_75 {dimension_numbers = #tpu.dot_dimension_numbers<[1], [0], [0], [1], [0, 0, 1, 1], [], []>} : vector<8x4xf32>, vector<4x896xf32>, vector<8x896xf32> -> vector<8x896xf32>
    %84 = arith.addf %78, %83 : vector<8x896xf32>
    %c0_76 = arith.constant 0 : index
    %c0_77 = arith.constant 0 : index
    %c112 = arith.constant 112 : index
    %85 = vector.load %arg1[%c0_76, %c0_77, %c112] : memref<1x4x1152xf32, #tpu.memory_space<vmem>>, vector<1x4x896xf32>
    %86 = vector.shape_cast %85 : vector<1x4x896xf32> to vector<4x896xf32>
    %c14 = arith.constant 14 : index
    %c0_78 = arith.constant 0 : index
    %c0_79 = arith.constant 0 : index
    %87 = vector.load %arg2[%c14, %c0_78, %c0_79] : memref<27x8x4xf32, #tpu.memory_space<vmem>>, vector<1x8x4xf32>
    %88 = vector.shape_cast %87 : vector<1x8x4xf32> to vector<8x4xf32>
    %cst_80 = arith.constant dense<0.000000e+00> : vector<8x896xf32>
    %89 = tpu.matmul %88, %86, %cst_80 {dimension_numbers = #tpu.dot_dimension_numbers<[1], [0], [0], [1], [0, 0, 1, 1], [], []>} : vector<8x4xf32>, vector<4x896xf32>, vector<8x896xf32> -> vector<8x896xf32>
    %90 = arith.addf %84, %89 : vector<8x896xf32>
    %c0_81 = arith.constant 0 : index
    %c0_82 = arith.constant 0 : index
    %c120 = arith.constant 120 : index
    %91 = vector.load %arg1[%c0_81, %c0_82, %c120] : memref<1x4x1152xf32, #tpu.memory_space<vmem>>, vector<1x4x896xf32>
    %92 = vector.shape_cast %91 : vector<1x4x896xf32> to vector<4x896xf32>
    %c15 = arith.constant 15 : index
    %c0_83 = arith.constant 0 : index
    %c0_84 = arith.constant 0 : index
    %93 = vector.load %arg2[%c15, %c0_83, %c0_84] : memref<27x8x4xf32, #tpu.memory_space<vmem>>, vector<1x8x4xf32>
    %94 = vector.shape_cast %93 : vector<1x8x4xf32> to vector<8x4xf32>
    %cst_85 = arith.constant dense<0.000000e+00> : vector<8x896xf32>
    %95 = tpu.matmul %94, %92, %cst_85 {dimension_numbers = #tpu.dot_dimension_numbers<[1], [0], [0], [1], [0, 0, 1, 1], [], []>} : vector<8x4xf32>, vector<4x896xf32>, vector<8x896xf32> -> vector<8x896xf32>
    %96 = arith.addf %90, %95 : vector<8x896xf32>
    %c0_86 = arith.constant 0 : index
    %c0_87 = arith.constant 0 : index
    %c121 = arith.constant 121 : index
    %97 = vector.load %arg1[%c0_86, %c0_87, %c121] : memref<1x4x1152xf32, #tpu.memory_space<vmem>>, vector<1x4x896xf32>
    %98 = vector.shape_cast %97 : vector<1x4x896xf32> to vector<4x896xf32>
    %c16 = arith.constant 16 : index
    %c0_88 = arith.constant 0 : index
    %c0_89 = arith.constant 0 : index
    %99 = vector.load %arg2[%c16, %c0_88, %c0_89] : memref<27x8x4xf32, #tpu.memory_space<vmem>>, vector<1x8x4xf32>
    %100 = vector.shape_cast %99 : vector<1x8x4xf32> to vector<8x4xf32>
    %cst_90 = arith.constant dense<0.000000e+00> : vector<8x896xf32>
    %101 = tpu.matmul %100, %98, %cst_90 {dimension_numbers = #tpu.dot_dimension_numbers<[1], [0], [0], [1], [0, 0, 1, 1], [], []>} : vector<8x4xf32>, vector<4x896xf32>, vector<8x896xf32> -> vector<8x896xf32>
    %102 = arith.addf %96, %101 : vector<8x896xf32>
    %c0_91 = arith.constant 0 : index
    %c0_92 = arith.constant 0 : index
    %c122 = arith.constant 122 : index
    %103 = vector.load %arg1[%c0_91, %c0_92, %c122] : memref<1x4x1152xf32, #tpu.memory_space<vmem>>, vector<1x4x896xf32>
    %104 = vector.shape_cast %103 : vector<1x4x896xf32> to vector<4x896xf32>
    %c17 = arith.constant 17 : index
    %c0_93 = arith.constant 0 : index
    %c0_94 = arith.constant 0 : index
    %105 = vector.load %arg2[%c17, %c0_93, %c0_94] : memref<27x8x4xf32, #tpu.memory_space<vmem>>, vector<1x8x4xf32>
    %106 = vector.shape_cast %105 : vector<1x8x4xf32> to vector<8x4xf32>
    %cst_95 = arith.constant dense<0.000000e+00> : vector<8x896xf32>
    %107 = tpu.matmul %106, %104, %cst_95 {dimension_numbers = #tpu.dot_dimension_numbers<[1], [0], [0], [1], [0, 0, 1, 1], [], []>} : vector<8x4xf32>, vector<4x896xf32>, vector<8x896xf32> -> vector<8x896xf32>
    %108 = arith.addf %102, %107 : vector<8x896xf32>
    %c0_96 = arith.constant 0 : index
    %c0_97 = arith.constant 0 : index
    %c200 = arith.constant 200 : index
    %109 = vector.load %arg1[%c0_96, %c0_97, %c200] : memref<1x4x1152xf32, #tpu.memory_space<vmem>>, vector<1x4x896xf32>
    %110 = vector.shape_cast %109 : vector<1x4x896xf32> to vector<4x896xf32>
    %c18 = arith.constant 18 : index
    %c0_98 = arith.constant 0 : index
    %c0_99 = arith.constant 0 : index
    %111 = vector.load %arg2[%c18, %c0_98, %c0_99] : memref<27x8x4xf32, #tpu.memory_space<vmem>>, vector<1x8x4xf32>
    %112 = vector.shape_cast %111 : vector<1x8x4xf32> to vector<8x4xf32>
    %cst_100 = arith.constant dense<0.000000e+00> : vector<8x896xf32>
    %113 = tpu.matmul %112, %110, %cst_100 {dimension_numbers = #tpu.dot_dimension_numbers<[1], [0], [0], [1], [0, 0, 1, 1], [], []>} : vector<8x4xf32>, vector<4x896xf32>, vector<8x896xf32> -> vector<8x896xf32>
    %114 = arith.addf %108, %113 : vector<8x896xf32>
    %c0_101 = arith.constant 0 : index
    %c0_102 = arith.constant 0 : index
    %c201 = arith.constant 201 : index
    %115 = vector.load %arg1[%c0_101, %c0_102, %c201] : memref<1x4x1152xf32, #tpu.memory_space<vmem>>, vector<1x4x896xf32>
    %116 = vector.shape_cast %115 : vector<1x4x896xf32> to vector<4x896xf32>
    %c19 = arith.constant 19 : index
    %c0_103 = arith.constant 0 : index
    %c0_104 = arith.constant 0 : index
    %117 = vector.load %arg2[%c19, %c0_103, %c0_104] : memref<27x8x4xf32, #tpu.memory_space<vmem>>, vector<1x8x4xf32>
    %118 = vector.shape_cast %117 : vector<1x8x4xf32> to vector<8x4xf32>
    %cst_105 = arith.constant dense<0.000000e+00> : vector<8x896xf32>
    %119 = tpu.matmul %118, %116, %cst_105 {dimension_numbers = #tpu.dot_dimension_numbers<[1], [0], [0], [1], [0, 0, 1, 1], [], []>} : vector<8x4xf32>, vector<4x896xf32>, vector<8x896xf32> -> vector<8x896xf32>
    %120 = arith.addf %114, %119 : vector<8x896xf32>
    %c0_106 = arith.constant 0 : index
    %c0_107 = arith.constant 0 : index
    %c202 = arith.constant 202 : index
    %121 = vector.load %arg1[%c0_106, %c0_107, %c202] : memref<1x4x1152xf32, #tpu.memory_space<vmem>>, vector<1x4x896xf32>
    %122 = vector.shape_cast %121 : vector<1x4x896xf32> to vector<4x896xf32>
    %c20_108 = arith.constant 20 : index
    %c0_109 = arith.constant 0 : index
    %c0_110 = arith.constant 0 : index
    %123 = vector.load %arg2[%c20_108, %c0_109, %c0_110] : memref<27x8x4xf32, #tpu.memory_space<vmem>>, vector<1x8x4xf32>
    %124 = vector.shape_cast %123 : vector<1x8x4xf32> to vector<8x4xf32>
    %cst_111 = arith.constant dense<0.000000e+00> : vector<8x896xf32>
    %125 = tpu.matmul %124, %122, %cst_111 {dimension_numbers = #tpu.dot_dimension_numbers<[1], [0], [0], [1], [0, 0, 1, 1], [], []>} : vector<8x4xf32>, vector<4x896xf32>, vector<8x896xf32> -> vector<8x896xf32>
    %126 = arith.addf %120, %125 : vector<8x896xf32>
    %c0_112 = arith.constant 0 : index
    %c0_113 = arith.constant 0 : index
    %c210 = arith.constant 210 : index
    %127 = vector.load %arg1[%c0_112, %c0_113, %c210] : memref<1x4x1152xf32, #tpu.memory_space<vmem>>, vector<1x4x896xf32>
    %128 = vector.shape_cast %127 : vector<1x4x896xf32> to vector<4x896xf32>
    %c21_114 = arith.constant 21 : index
    %c0_115 = arith.constant 0 : index
    %c0_116 = arith.constant 0 : index
    %129 = vector.load %arg2[%c21_114, %c0_115, %c0_116] : memref<27x8x4xf32, #tpu.memory_space<vmem>>, vector<1x8x4xf32>
    %130 = vector.shape_cast %129 : vector<1x8x4xf32> to vector<8x4xf32>
    %cst_117 = arith.constant dense<0.000000e+00> : vector<8x896xf32>
    %131 = tpu.matmul %130, %128, %cst_117 {dimension_numbers = #tpu.dot_dimension_numbers<[1], [0], [0], [1], [0, 0, 1, 1], [], []>} : vector<8x4xf32>, vector<4x896xf32>, vector<8x896xf32> -> vector<8x896xf32>
    %132 = arith.addf %126, %131 : vector<8x896xf32>
    %c0_118 = arith.constant 0 : index
    %c0_119 = arith.constant 0 : index
    %c211 = arith.constant 211 : index
    %133 = vector.load %arg1[%c0_118, %c0_119, %c211] : memref<1x4x1152xf32, #tpu.memory_space<vmem>>, vector<1x4x896xf32>
    %134 = vector.shape_cast %133 : vector<1x4x896xf32> to vector<4x896xf32>
    %c22_120 = arith.constant 22 : index
    %c0_121 = arith.constant 0 : index
    %c0_122 = arith.constant 0 : index
    %135 = vector.load %arg2[%c22_120, %c0_121, %c0_122] : memref<27x8x4xf32, #tpu.memory_space<vmem>>, vector<1x8x4xf32>
    %136 = vector.shape_cast %135 : vector<1x8x4xf32> to vector<8x4xf32>
    %cst_123 = arith.constant dense<0.000000e+00> : vector<8x896xf32>
    %137 = tpu.matmul %136, %134, %cst_123 {dimension_numbers = #tpu.dot_dimension_numbers<[1], [0], [0], [1], [0, 0, 1, 1], [], []>} : vector<8x4xf32>, vector<4x896xf32>, vector<8x896xf32> -> vector<8x896xf32>
    %138 = arith.addf %132, %137 : vector<8x896xf32>
    %c0_124 = arith.constant 0 : index
    %c0_125 = arith.constant 0 : index
    %c212 = arith.constant 212 : index
    %139 = vector.load %arg1[%c0_124, %c0_125, %c212] : memref<1x4x1152xf32, #tpu.memory_space<vmem>>, vector<1x4x896xf32>
    %140 = vector.shape_cast %139 : vector<1x4x896xf32> to vector<4x896xf32>
    %c23 = arith.constant 23 : index
    %c0_126 = arith.constant 0 : index
    %c0_127 = arith.constant 0 : index
    %141 = vector.load %arg2[%c23, %c0_126, %c0_127] : memref<27x8x4xf32, #tpu.memory_space<vmem>>, vector<1x8x4xf32>
    %142 = vector.shape_cast %141 : vector<1x8x4xf32> to vector<8x4xf32>
    %cst_128 = arith.constant dense<0.000000e+00> : vector<8x896xf32>
    %143 = tpu.matmul %142, %140, %cst_128 {dimension_numbers = #tpu.dot_dimension_numbers<[1], [0], [0], [1], [0, 0, 1, 1], [], []>} : vector<8x4xf32>, vector<4x896xf32>, vector<8x896xf32> -> vector<8x896xf32>
    %144 = arith.addf %138, %143 : vector<8x896xf32>
    %c0_129 = arith.constant 0 : index
    %c0_130 = arith.constant 0 : index
    %c220 = arith.constant 220 : index
    %145 = vector.load %arg1[%c0_129, %c0_130, %c220] : memref<1x4x1152xf32, #tpu.memory_space<vmem>>, vector<1x4x896xf32>
    %146 = vector.shape_cast %145 : vector<1x4x896xf32> to vector<4x896xf32>
    %c24 = arith.constant 24 : index
    %c0_131 = arith.constant 0 : index
    %c0_132 = arith.constant 0 : index
    %147 = vector.load %arg2[%c24, %c0_131, %c0_132] : memref<27x8x4xf32, #tpu.memory_space<vmem>>, vector<1x8x4xf32>
    %148 = vector.shape_cast %147 : vector<1x8x4xf32> to vector<8x4xf32>
    %cst_133 = arith.constant dense<0.000000e+00> : vector<8x896xf32>
    %149 = tpu.matmul %148, %146, %cst_133 {dimension_numbers = #tpu.dot_dimension_numbers<[1], [0], [0], [1], [0, 0, 1, 1], [], []>} : vector<8x4xf32>, vector<4x896xf32>, vector<8x896xf32> -> vector<8x896xf32>
    %150 = arith.addf %144, %149 : vector<8x896xf32>
    %c0_134 = arith.constant 0 : index
    %c0_135 = arith.constant 0 : index
    %c221 = arith.constant 221 : index
    %151 = vector.load %arg1[%c0_134, %c0_135, %c221] : memref<1x4x1152xf32, #tpu.memory_space<vmem>>, vector<1x4x896xf32>
    %152 = vector.shape_cast %151 : vector<1x4x896xf32> to vector<4x896xf32>
    %c25 = arith.constant 25 : index
    %c0_136 = arith.constant 0 : index
    %c0_137 = arith.constant 0 : index
    %153 = vector.load %arg2[%c25, %c0_136, %c0_137] : memref<27x8x4xf32, #tpu.memory_space<vmem>>, vector<1x8x4xf32>
    %154 = vector.shape_cast %153 : vector<1x8x4xf32> to vector<8x4xf32>
    %cst_138 = arith.constant dense<0.000000e+00> : vector<8x896xf32>
    %155 = tpu.matmul %154, %152, %cst_138 {dimension_numbers = #tpu.dot_dimension_numbers<[1], [0], [0], [1], [0, 0, 1, 1], [], []>} : vector<8x4xf32>, vector<4x896xf32>, vector<8x896xf32> -> vector<8x896xf32>
    %156 = arith.addf %150, %155 : vector<8x896xf32>
    %c0_139 = arith.constant 0 : index
    %c0_140 = arith.constant 0 : index
    %c222 = arith.constant 222 : index
    %157 = vector.load %arg1[%c0_139, %c0_140, %c222] : memref<1x4x1152xf32, #tpu.memory_space<vmem>>, vector<1x4x896xf32>
    %158 = vector.shape_cast %157 : vector<1x4x896xf32> to vector<4x896xf32>
    %c26 = arith.constant 26 : index
    %c0_141 = arith.constant 0 : index
    %c0_142 = arith.constant 0 : index
    %159 = vector.load %arg2[%c26, %c0_141, %c0_142] : memref<27x8x4xf32, #tpu.memory_space<vmem>>, vector<1x8x4xf32>
    %160 = vector.shape_cast %159 : vector<1x8x4xf32> to vector<8x4xf32>
    %cst_143 = arith.constant dense<0.000000e+00> : vector<8x896xf32>
    %161 = tpu.matmul %160, %158, %cst_143 {dimension_numbers = #tpu.dot_dimension_numbers<[1], [0], [0], [1], [0, 0, 1, 1], [], []>} : vector<8x4xf32>, vector<4x896xf32>, vector<8x896xf32> -> vector<8x896xf32>
    %162 = arith.addf %156, %161 : vector<8x896xf32>
    %c0_144 = arith.constant 0 : index
    %c0_145 = arith.constant 0 : index
    %163 = vector.load %arg3[%c0_144, %c0_145] : memref<1x896xf32, #tpu.memory_space<vmem>>, vector<1x896xf32>
    %164 = vector.broadcast %163 : vector<1x896xf32> to vector<8x896xf32>
    %165 = arith.mulf %162, %164 : vector<8x896xf32>
    %166 = arith.truncf %165 : vector<8x896xf32> to vector<8x896xbf16>
    %c0_146 = arith.constant 0 : index
    %c0_147 = arith.constant 0 : index
    %c0_148 = arith.constant 0 : index
    %167 = vector.load %arg4[%c0_146, %c0_147, %c0_148] : memref<1x8x896xbf16, #tpu.memory_space<vmem>>, vector<1x8x896xbf16>
    %168 = vector.shape_cast %167 : vector<1x8x896xbf16> to vector<8x896xbf16>
    %169 = vector.shape_cast %166 : vector<8x896xbf16> to vector<1x8x896xbf16>
    tpu.vector_store %arg4[%c0_146, %c0_147, %c0_148], %169 {strides = array<i32>} : memref<1x8x896xbf16, #tpu.memory_space<vmem>>, vector<1x8x896xbf16>,
    %cst_149 = arith.constant dense<0.000000e+00> : vector<8xf32>
    %170 = vector.multi_reduction <add>, %165, %cst_149 [1] : vector<8x896xf32> to vector<8xf32>
    %171 = vector.shape_cast %170 : vector<8xf32> to vector<8x1xf32>
    %c0_150 = arith.constant 0 : index
    %c0_151 = arith.constant 0 : index
    %c0_152 = arith.constant 0 : index
    %172 = vector.load %arg5[%c0_150, %c0_151, %c0_152] : memref<1x8x1xf32, #tpu.memory_space<vmem>>, vector<1x8x1xf32>
    %173 = vector.shape_cast %172 : vector<1x8x1xf32> to vector<8x1xf32>
    %174 = vector.shape_cast %171 : vector<8x1xf32> to vector<1x8x1xf32>
    tpu.vector_store %arg5[%c0_150, %c0_151, %c0_152], %174 {strides = array<i32>} : memref<1x8x1xf32, #tpu.memory_space<vmem>>, vector<1x8x1xf32>,
    %175 = arith.mulf %165, %165 : vector<8x896xf32>
    %cst_153 = arith.constant dense<0.000000e+00> : vector<8xf32>
    %176 = vector.multi_reduction <add>, %175, %cst_153 [1] : vector<8x896xf32> to vector<8xf32>
    %177 = vector.shape_cast %176 : vector<8xf32> to vector<8x1xf32>
    %c0_154 = arith.constant 0 : index
    %c0_155 = arith.constant 0 : index
    %c0_156 = arith.constant 0 : index
    %178 = vector.load %arg6[%c0_154, %c0_155, %c0_156] : memref<1x8x1xf32, #tpu.memory_space<vmem>>, vector<1x8x1xf32>
    %179 = vector.shape_cast %178 : vector<1x8x1xf32> to vector<8x1xf32>
    %180 = vector.shape_cast %177 : vector<8x1xf32> to vector<1x8x1xf32>
    tpu.vector_store %arg6[%c0_154, %c0_155, %c0_156], %180 {strides = array<i32>} : memref<1x8x1xf32, #tpu.memory_space<vmem>>, vector<1x8x1xf32>,
    return
  }
  func.func @transform_0(%arg0: i32) -> (i32, i32, i32) {
    %c0_i32 = arith.constant 0 : i32
    %c0_i32_0 = arith.constant 0 : i32
    %c0_i32_1 = arith.constant 0 : i32
    return %arg0, %c0_i32, %c0_i32_0 : i32, i32, i32
  }
  func.func @transform_1(%arg0: i32) -> (i32, i32, i32) {
    %c0_i32 = arith.constant 0 : i32
    %c0_i32_0 = arith.constant 0 : i32
    %c0_i32_1 = arith.constant 0 : i32
    %c0_i32_2 = arith.constant 0 : i32
    return %c0_i32, %c0_i32_0, %c0_i32_1 : i32, i32, i32
  }
  func.func @transform_2(%arg0: i32) -> (i32, i32) {
    %c0_i32 = arith.constant 0 : i32
    %c0_i32_0 = arith.constant 0 : i32
    %c0_i32_1 = arith.constant 0 : i32
    return %c0_i32, %c0_i32_0 : i32, i32
  }
  func.func @transform_3(%arg0: i32) -> (i32, i32, i32) {
    %c0_i32 = arith.constant 0 : i32
    %c0_i32_0 = arith.constant 0 : i32
    %c0_i32_1 = arith.constant 0 : i32
    return %arg0, %c0_i32, %c0_i32_0 : i32, i32, i32
  }
  func.func @transform_4(%arg0: i32) -> (i32, i32, i32) {
    %c0_i32 = arith.constant 0 : i32
    %c0_i32_0 = arith.constant 0 : i32
    %c0_i32_1 = arith.constant 0 : i32
    return %arg0, %c0_i32, %c0_i32_0 : i32, i32, i32
  }
  func.func @transform_5(%arg0: i32) -> (i32, i32, i32) {
    %c0_i32 = arith.constant 0 : i32
    %c0_i32_0 = arith.constant 0 : i32
    %c0_i32_1 = arith.constant 0 : i32
    return %arg0, %c0_i32, %c0_i32_0 : i32, i32, i32
  }
}

module attributes {stable_mosaic.version = 11 : i64} {
  func.func @kernel(%arg0: i32, %arg1: memref<16x896xbf16, #tpu.memory_space<vmem>>, %arg2: memref<16x1xf32, #tpu.memory_space<vmem>>, %arg3: memref<16x1xf32, #tpu.memory_space<vmem>>, %arg4: memref<16x896xf32, #tpu.memory_space<vmem>>) attributes {dimension_semantics = [#tpu.dimension_semantics<parallel>], iteration_bounds = array<i64: 1>, scalar_prefetch = 0 : i64, scratch_operands = 0 : i64, tpu.core_type = #tpu.core_type<tc>, window_params = [{transform_indices = @transform_0, window_bounds = array<i64: 16, 896>}, {pipeline_mode = #tpu.pipeline_mode<synchronous>, transform_indices = @transform_1, window_bounds = array<i64: 16, 1>}, {pipeline_mode = #tpu.pipeline_mode<synchronous>, transform_indices = @transform_2, window_bounds = array<i64: 16, 1>}, {transform_indices = @transform_3, window_bounds = array<i64: 16, 896>}]} {
    %c0 = arith.constant 0 : index
    %c0_0 = arith.constant 0 : index
    %0 = vector.load %arg1[%c0, %c0_0] : memref<16x896xbf16, #tpu.memory_space<vmem>>, vector<16x896xbf16>
    %1 = arith.extf %0 : vector<16x896xbf16> to vector<16x896xf32>
    %c0_1 = arith.constant 0 : index
    %c0_2 = arith.constant 0 : index
    %2 = vector.load %arg2[%c0_1, %c0_2] : memref<16x1xf32, #tpu.memory_space<vmem>>, vector<16x1xf32>
    %3 = vector.broadcast %2 : vector<16x1xf32> to vector<16x896xf32>
    %4 = arith.mulf %1, %3 : vector<16x896xf32>
    %c0_3 = arith.constant 0 : index
    %c0_4 = arith.constant 0 : index
    %5 = vector.load %arg3[%c0_3, %c0_4] : memref<16x1xf32, #tpu.memory_space<vmem>>, vector<16x1xf32>
    %6 = vector.broadcast %5 : vector<16x1xf32> to vector<16x896xf32>
    %7 = arith.addf %4, %6 : vector<16x896xf32>
    %cst = arith.constant 0.000000e+00 : f32
    %8 = vector.broadcast %cst : f32 to vector<16x896xf32>
    %9 = arith.maximumf %7, %8 : vector<16x896xf32>
    %c0_5 = arith.constant 0 : index
    %c0_6 = arith.constant 0 : index
    %10 = vector.load %arg4[%c0_5, %c0_6] : memref<16x896xf32, #tpu.memory_space<vmem>>, vector<16x896xf32>
    tpu.vector_store %arg4[%c0_5, %c0_6], %9 {strides = array<i32>} : memref<16x896xf32, #tpu.memory_space<vmem>>, vector<16x896xf32>,
    return
  }
  func.func @transform_0(%arg0: i32) -> (i32, i32) {
    %c0_i32 = arith.constant 0 : i32
    %c0_i32_0 = arith.constant 0 : i32
    return %c0_i32, %arg0 : i32, i32
  }
  func.func @transform_1(%arg0: i32) -> (i32, i32) {
    %c0_i32 = arith.constant 0 : i32
    %c0_i32_0 = arith.constant 0 : i32
    %c0_i32_1 = arith.constant 0 : i32
    return %c0_i32, %c0_i32_0 : i32, i32
  }
  func.func @transform_2(%arg0: i32) -> (i32, i32) {
    %c0_i32 = arith.constant 0 : i32
    %c0_i32_0 = arith.constant 0 : i32
    %c0_i32_1 = arith.constant 0 : i32
    return %c0_i32, %c0_i32_0 : i32, i32
  }
  func.func @transform_3(%arg0: i32) -> (i32, i32) {
    %c0_i32 = arith.constant 0 : i32
    %c0_i32_0 = arith.constant 0 : i32
    return %c0_i32, %arg0 : i32, i32
  }
}

</mosaic_0001>

<bundles_post_ra>
// kernel: tile.18
= control target key start
LH: loop header
LB: loop body
LE: loop exit
PB: predicated region body
PF: predicated region fallthrough
CT: control target
= control target key end

     0   :  { %s22_s0 = inlined_call_operand.vmem [shape: f32[8], index: 0, kind: input, shape index: {}]   ;;  %s23_s1 = inlined_call_operand.vmem [shape: f32[2,8], index: 1, kind: output, shape index: {}]  }
   0x1   :  { %v4_v0 = vld [vmem:[%s22_s0] ss:$0 sm:$0xff] }
   0x2   :  { %5 = vst [vmem:[%s23_s1] sm:$0x3] %v4_v0 }

// kernel: tile.0
= control target key start
LH: loop header
LB: loop body
LE: loop exit
PB: predicated region body
PF: predicated region fallthrough
CT: control target
= control target key end

     0   :  { %s66_s8 = smov 125   ;;  %vm7_vm0 = vcmask 7168   ;;  %s67_s11 = smov 126   ;;  %s117_s0 = inlined_call_operand.vmem [shape: f32[2,8], index: 0, kind: input, shape index: {}]   ;;  %s118_s1 = inlined_call_operand.vmem [shape: f32[16,1], index: 1, kind: output, shape index: {}]  }
   0x1   :  { %v4_v0 = vld [vmem:[%s117_s0] sm:$0x3]  ;;  %s65_s0 = smov 127   ;;  %s68_s12 = smov 124  }
   0x2   :  { %5 = vst [vmem:[#allocation0] sm:$0x3] %v4_v0  ;;  %s69_s13 = smov 123   ;;  %s70_s14 = smov 122  }
   0x3   :  { %s71_s15 = smov 121  }
   0x9   :  { %v9_v1 = vld [vmem:[#allocation0] sm:$0x3]  }
   0xa   :  { %v21_v2 = vld [vmem:[#allocation0] sm:$0x3]   ;;  %10 = vrot.lane.b32.xlu0 %v9_v1, %s65_s0 }
   0xb   :  { %22 = vrot.lane.b32.xlu1 %v21_v2, %s66_s8  ;;  %v15_v3 = vld [vmem:[#allocation0] sm:$0x3]  }
   0xc   :  { %v27_v4 = vld [vmem:[#allocation0] sm:$0x3]  }
   0xd   :  { %v6_v5 = vld [vmem:[#allocation0] sm:$0x3]  }
   0xe   :  { %8 = vst.msk [vmem:[%s118_s1] ss:$8 sm:$0x3] %vm7_vm0, %v6_v5   ;;  %16 = vrot.lane.b32.xlu0 %v15_v3, %s67_s11  ;;  %v33_v6 = vld [vmem:[#allocation0] sm:$0x3]  }
   0xf   :  { %28 = vrot.lane.b32.xlu1 %v27_v4, %s68_s12  ;;  %v39_v7 = vld [vmem:[#allocation0] sm:$0x3]  }
  0x10   :  { %v45_v8 = vld [vmem:[#allocation0] sm:$0x3]  }
  0x12   :  { %34 = vrot.lane.b32.xlu0 %v33_v6, %s69_s13 }
  0x13   :  { %40 = vrot.lane.b32.xlu1 %v39_v7, %s70_s14 }
  0x16   :  { %46 = vrot.lane.b32.xlu0 %v45_v8, %s71_s15 }
  0x7c   :  { %v11_v9 = vpop.permute.xlu0 %10  }
  0x7d   :  { %v23_v10 = vpop.permute.xlu1 %22   ;;  %51 = vst.msk [vmem:[%s118_s1 + $0x1] ss:$8 sm:$0x3] %vm7_vm0, %v11_v9  }
  0x7e   :  { %53 = vst.msk [vmem:[%s118_s1 + $0x3] ss:$8 sm:$0x3] %vm7_vm0, %v23_v10  }
  0x80   :  { %v17_v11 = vpop.permute.xlu0 %16  }
  0x81   :  { %v29_v12 = vpop.permute.xlu1 %28   ;;  %52 = vst.msk [vmem:[%s118_s1 + $0x2] ss:$8 sm:$0x3] %vm7_vm0, %v17_v11  }
  0x82   :  { %54 = vst.msk [vmem:[%s118_s1 + $0x4] ss:$8 sm:$0x3] %vm7_vm0, %v29_v12  }
  0x84   :  { %v35_v13 = vpop.permute.xlu0 %34  }
  0x85   :  { %v41_v14 = vpop.permute.xlu1 %40   ;;  %55 = vst.msk [vmem:[%s118_s1 + $0x5] ss:$8 sm:$0x3] %vm7_vm0, %v35_v13  }
  0x86   :  { %56 = vst.msk [vmem:[%s118_s1 + $0x6] ss:$8 sm:$0x3] %vm7_vm0, %v41_v14  }
  0x88   :  { %v47_v15 = vpop.permute.xlu0 %46  }
  0x89   :  { %57 = vst.msk [vmem:[%s118_s1 + $0x7] ss:$8 sm:$0x3] %vm7_vm0, %v47_v15  }

// kernel: basic_conv3d_forward.3
= control target key start
LH: loop header
LB: loop body
LE: loop exit
PB: predicated region body
PF: predicated region fallthrough
CT: control target
= control target key end

     0   :  { %v123_v0 = vmov 0   ;;  %s219_s2 = inlined_call_operand.vmem [shape: f32[16,1], index: 2, kind: input, shape index: {}]   ;;  %s220_s1 = inlined_call_operand.vmem [shape: f32[16,1], index: 1, kind: input, shape index: {}]   ;;  %s221_s0 = inlined_call_operand.vmem [shape: bf16[16,896], index: 0, kind: input, shape index: {}]   ;;  %s222_s3 = inlined_call_operand.vmem [shape: f32[16,896], index: 3, kind: output, shape index: {}]  }
   0x1   :  { %122 = vset.pattern.permute.xlu1 %v123_v0  ;;  %121 = vset.pattern.permute.xlu0 %v123_v0  ;;  %v62_v1 = vld [vmem:[%s219_s2] sm:$0xff]  ;;  %v63_v3 = vld [vmem:[%s219_s2 + $0x8] sm:$0xff]  ;;  %v16_v7 = vld [vmem:[%s221_s0 + $0x10] sm:$0xff] }
   0x2   :  { %v36_v2 = vld [vmem:[%s220_s1] sm:$0xff]  ;;  %66 = vperm.xlu1 %122, %v62_v1   ;;  %v37_v4 = vld [vmem:[%s220_s1 + $0x8] sm:$0xff]  ;;  %v17_v8 = vld [vmem:[%s221_s0 + $0x18] ss:$28 sps:$4 sm:$0xff]   ;;  %v26_v16 = vunpack.c.l.bf16 %v16_v7  ;;  %v27_v17 = vunpack.c.h.bf16 %v16_v7 }
   0x3   :  { %40 = vperm.xlu0 %121, %v36_v2   ;;  %v14_v5 = vld [vmem:[%s221_s0] sm:$0xff]  ;;  %v15_v6 = vld [vmem:[%s221_s0 + $0x8] sm:$0xff]  ;;  %v28_v18 = vunpack.c.l.bf16 %v17_v8  ;;  %v35_v42 = vunpack.c.h.bf16 %v17_v8 }
   0x4   :  { %v18_v9 = vld [vmem:[%s221_s0 + $0x1c] sm:$0xff]  ;;  %v22_v10 = vunpack.c.l.bf16 %v14_v5  ;;  %v23_v11 = vunpack.c.h.bf16 %v14_v5  ;;  %v24_v12 = vunpack.c.l.bf16 %v15_v6  ;;  %v25_v13 = vunpack.c.h.bf16 %v15_v6  ;;  %v19_v14 = vld [vmem:[%s221_s0 + $0x24] sm:$0xff]  ;;  %v20_v15 = vld [vmem:[%s221_s0 + $0x2c] sm:$0xff] }
   0x5   :  { %v29_v19 = vunpack.c.l.bf16 %v18_v9  ;;  %v30_v21 = vunpack.c.h.bf16 %v18_v9  ;;  %v31_v22 = vunpack.c.l.bf16 %v19_v14  ;;  %v32_v23 = vunpack.c.h.bf16 %v19_v14 }
   0x6   :  { %71 = vperm.xlu1 %122, %v63_v3   ;;  %v33_v24 = vunpack.c.l.bf16 %v20_v15  ;;  %v34_v33 = vunpack.c.h.bf16 %v20_v15 }
   0x7   :  { %45 = vperm.xlu0 %121, %v37_v4  }
  0x81   :  { %v67_v25 = vpop.permute.xlu1 %66 }
  0x82   :  { %v41_v20 = vpop.permute.xlu0 %40 }
  0x83   :  { %v48_v26 = vmul.f32 %v41_v20, %v22_v10  ;;  %v49_v27 = vmul.f32 %v41_v20, %v23_v11  ;;  %v50_v28 = vmul.f32 %v41_v20, %v24_v12  ;;  %v51_v29 = vmul.f32 %v41_v20, %v25_v13 }
  0x84   :  { %v52_v30 = vmul.f32 %v41_v20, %v26_v16  ;;  %v53_v31 = vmul.f32 %v41_v20, %v27_v17  ;;  %v54_v32 = vmul.f32 %v41_v20, %v28_v18 }
  0x85   :  { %v74_v34 = vadd.f32 %v67_v25, %v48_v26  ;;  %v75_v35 = vadd.f32 %v67_v25, %v49_v27  ;;  %v76_v36 = vadd.f32 %v67_v25, %v50_v28  ;;  %v77_v37 = vadd.f32 %v67_v25, %v51_v29  ;;  %v72_v51 = vpop.permute.xlu1 %71 }
  0x86   :  { %v78_v38 = vadd.f32 %v67_v25, %v52_v30  ;;  %v79_v39 = vadd.f32 %v67_v25, %v53_v31  ;;  %v80_v40 = vadd.f32 %v67_v25, %v54_v32  ;;  %v46_v41 = vpop.permute.xlu0 %45 }
  0x87   :  { %v88_v43 = vmax.f32 %v74_v34, 0.0  ;;  %v89_v44 = vmax.f32 %v75_v35, 0.0  ;;  %v90_v45 = vmax.f32 %v76_v36, 0.0  ;;  %v91_v46 = vmax.f32 %v77_v37, 0.0 }
  0x88   :  { %v92_v47 = vmax.f32 %v78_v38, 0.0  ;;  %v93_v48 = vmax.f32 %v79_v39, 0.0  ;;  %v94_v49 = vmax.f32 %v80_v40, 0.0  ;;  %v55_v50 = vmul.f32 %v46_v41, %v29_v19 }
  0x89   :  { %102 = vst [vmem:[%s222_s3] sm:$0xff] %v88_v43  ;;  %103 = vst [vmem:[%s222_s3 + $0x8] sm:$0xff] %v89_v44  ;;  %v56_v52 = vmul.f32 %v46_v41, %v30_v21  ;;  %v57_v53 = vmul.f32 %v46_v41, %v31_v22  ;;  %v58_v54 = vmul.f32 %v46_v41, %v32_v23 }
  0x8a   :  { %104 = vst [vmem:[%s222_s3 + $0x10] sm:$0xff] %v90_v45  ;;  %105 = vst [vmem:[%s222_s3 + $0x18] sm:$0xff] %v91_v46  ;;  %v59_v55 = vmul.f32 %v46_v41, %v33_v24  ;;  %v60_v56 = vmul.f32 %v46_v41, %v34_v33  ;;  %v61_v57 = vmul.f32 %v46_v41, %v35_v42 }
  0x8b   :  { %106 = vst [vmem:[%s222_s3 + $0x20] sm:$0xff] %v92_v47  ;;  %107 = vst [vmem:[%s222_s3 + $0x28] sm:$0xff] %v93_v48  ;;  %v81_v58 = vadd.f32 %v72_v51, %v55_v50  ;;  %v82_v59 = vadd.f32 %v72_v51, %v56_v52  ;;  %v83_v60 = vadd.f32 %v72_v51, %v57_v53 }
  0x8c   :  { %108 = vst [vmem:[%s222_s3 + $0x30] sm:$0xff] %v94_v49  ;;  %v84_v61 = vadd.f32 %v72_v51, %v58_v54  ;;  %v85_v62 = vadd.f32 %v72_v51, %v59_v55  ;;  %v86_v63 = vadd.f32 %v72_v51, %v60_v56  ;;  %v87_v0 = vadd.f32 %v72_v51, %v61_v57 }
  0x8d   :  { %v95_v1 = vmax.f32 %v81_v58, 0.0  ;;  %v96_v2 = vmax.f32 %v82_v59, 0.0  ;;  %v97_v3 = vmax.f32 %v83_v60, 0.0 }
  0x8e   :  { %v98_v4 = vmax.f32 %v84_v61, 0.0  ;;  %v99_v5 = vmax.f32 %v85_v62, 0.0  ;;  %v100_v6 = vmax.f32 %v86_v63, 0.0  ;;  %v101_v7 = vmax.f32 %v87_v0, 0.0 }
  0x8f   :  { %109 = vst [vmem:[%s222_s3 + $0x38] sm:$0xff] %v95_v1  ;;  %110 = vst [vmem:[%s222_s3 + $0x40] sm:$0xff] %v96_v2 }
  0x90   :  { %111 = vst [vmem:[%s222_s3 + $0x48] sm:$0xff] %v97_v3  ;;  %112 = vst [vmem:[%s222_s3 + $0x50] sm:$0xff] %v98_v4 }
  0x91   :  { %113 = vst [vmem:[%s222_s3 + $0x58] sm:$0xff] %v99_v5  ;;  %114 = vst [vmem:[%s222_s3 + $0x60] sm:$0xff] %v100_v6 }
  0x92   :  { %115 = vst [vmem:[%s222_s3 + $0x68] sm:$0xff] %v101_v7 }

// kernel: basic_conv3d_forward.2
= control target key start
LH: loop header
LB: loop body
LE: loop exit
PB: predicated region body
PF: predicated region fallthrough
CT: control target
= control target key end

     0   :  { %s10589_s18 = smov 0   ;;  %s11719_s0 = inlined_call_operand.vmem [shape: f32[2,4,1152], index: 0, kind: input, shape index: {}]   ;;  %s11720_s1 = inlined_call_operand.vmem [shape: f32[27,8,4], index: 1, kind: input, shape index: {}]   ;;  %s11721_s2 = inlined_call_operand.vmem [shape: f32[1,896], index: 2, kind: input, shape index: {}]   ;;  %s11722_s3 = inlined_call_operand.vmem [shape: bf16[2,8,896], index: 3, kind: output, shape index: {0}]   ;;  %s11723_s4 = inlined_call_operand.vmem [shape: f32[2,8,1], index: 4, kind: output, shape index: {1}]   ;;  %s11724_s5 = inlined_call_operand.vmem [shape: f32[2,8,1], index: 5, kind: output, shape index: {2}]  }
   0x1 LB: > { %s9734_s19 = sadd.s32 4294967295, %s10529_s18   ;;  %p9738_p0 = scmp.ge.s32.totalorder %s10529_s18, 1  ;;  %s10529_s18 = sphi %s10589_s18, %s16_s18  }
   0x2   : > { %p192_p1 = scmp.lt.s32.totalorder %s10529_s18, 3 }
   0x4   : > { %p193_p2 = pnand %p9738_p0, %p192_p1 }
   0x5   : > { %p228_p3 = scmp.lt.s32.totalorder (!%p193_p2), %s9734_s19, 1  ;;  %v10531_v0 = vmov (!%p193_p2), 0.0   ;;  %s10532_s24 = smov (!%p193_p2), 127   ;;  %vm278_vm0 = vcmask (!%p193_p2), 1039360   ;;  %vm290_vm1 = vcmask (!%p193_p2), 1043456   ;;  %v9743_v15 = vld [vmem:[%s11720_s1 + $0x8] sm:$0xff] (!%p193_p2) }
   0x6   : > { %196 = sbr.rel (%p193_p2) target bundleno = 915 (0x393), region = 32  ;;  %369 = vmatprep.mubr.f32.mxu0 (!%p193_p2), %v10531_v0  ;;  %440 = vmatprep.mubr.f32.mxu1 (!%p193_p2), %v10531_v0  ;;  %s10533_s25 = smov (!%p193_p2), 126   ;;  %vm286_vm2 = vcmask (!%p193_p2), 31744   ;;  %vm10540_vm3 = vmmov (!%p193_p2), 0   ;;  %v250_v27 = vld [vmem:[%s11720_s1] sm:$0xff] (!%p193_p2)  ;;  %vm919_vm4 = vcmask (!%p193_p2), 1031168  }
   0x7   : > { %s10534_s26 = smov (!%p193_p2), 118   ;;  %s10535_s27 = smov (!%p193_p2), 117   ;;  %v9766_v39 = vld [vmem:[%s11720_s1 + $0x10] sm:$0xff] (!%p193_p2)  ;;  %vm1264_vm5 = vcmask (!%p193_p2), 965632   ;;  %v9778_v49 = vld [vmem:[%s11720_s1 + $0x18] sm:$0xff] (!%p193_p2)  ;;  %vm1609_vm6 = vcmask (!%p193_p2), 957440  }
   0x8   : > { %s10536_s28 = smov (!%p193_p2), 116   ;;  %s10537_s29 = smov (!%p193_p2), 108   ;;  %vm1954_vm7 = vcmask (!%p193_p2), 949248   ;;  %vm2299_vm8 = vcmask (!%p193_p2), 883712   ;;  %vm2644_vm9 = vcmask (!%p193_p2), 875520   ;;  %vm2989_vm10 = vcmask (!%p193_p2), 867328  }
   0x9   : > { %s10538_s30 = smov (!%p193_p2), 107   ;;  %s10539_s6 = smov (!%p193_p2), 106   ;;  %vm3334_vm11 = vcmask (!%p193_p2), 228352   ;;  %vm3679_vm12 = vcmask (!%p193_p2), 220160   ;;  %vm4024_vm13 = vcmask (!%p193_p2), 211968   ;;  %vm4369_vm14 = vcmask (!%p193_p2), 146432  }
   0xa   : > { %s10541_s9 = smov (!%p193_p2), 28   ;;  %s10542_s14 = smov (!%p193_p2), 27   ;;  %vm4714_vm15 = vcmask (!%p193_p2), 138240  }
   0xb   : > { %s10543_s17 = smov (!%p193_p2), 26   ;;  %s10544_s22 = smov (!%p193_p2), 18  }
   0xc   : > { %s10547_s7 = smov (!%p193_p2), 8   ;;  %s10548_s10 = smov (!%p193_p2), 7  }
   0xd   : > { %s11726_s19 = smov (!%p228_p3, %s9734_s19), 1  ;;  %s10549_s13 = smov 6  }
   0xe   : > { %s10473_s20 = smul.u32 36, %s11726_s19  ;;  %s10550_s16 = smov 56  }
   0xf   : > { %s10555_s8 = smov 44   ;;  %s10556_s11 = smov 36  }
  0x10   : > { %s10603_s23 = scalar_lea.vmem %s11719_s0, %s10473_s20 }
  0x11   : > { %v10608_v1 = vld [vmem:[%s10603_s23 + $0x8] sm:$0xff]  ;;  %v10611_v2 = vld [vmem:[%s10603_s23] sm:$0xff]  ;;  %v10620_v4 = vld [vmem:[%s10603_s23 + $0x10] sm:$0xff] }
  0x12   : > { %266 = vrot.lane.b32.xlu0 %v10608_v1, %s10532_s24  ;;  %262 = vrot.lane.b32.xlu1 %v10611_v2, %s10532_s24  ;;  %v10617_v3 = vcombine.high %v10608_v1, %v10608_v1  ;;  %v10626_v5 = vcombine.high %v10620_v4, %v10620_v4  ;;  %v10630_v6 = vcombine.high %v10611_v2, %v10611_v2  ;;  %v10633_v7 = vld [vmem:[%s10603_s23 + $0x18] sm:$0xff] }
  0x13   : > { %v10639_v8 = vcombine.high %v10633_v7, %v10633_v7  ;;  %v249_v31 = vld [vmem:[%s10603_s23 + $0x18] sm:$0xf] }
  0x16   : > { %270 = vrot.lane.b32.xlu0 %v10620_v4, %s10532_s24  ;;  %268 = vrot.lane.b32.xlu1 %v10617_v3, %s10532_s24 }
  0x1a   : > { %272 = vrot.lane.b32.xlu1 %v10626_v5, %s10532_s24  ;;  %264 = vrot.lane.b32.xlu0 %v10630_v6, %s10532_s24 }
  0x1e   : > { %276 = vrot.lane.b32.xlu1 %v10639_v8, %s10532_s24  ;;  %274 = vrot.lane.b32.xlu0 %v10633_v7, %s10532_s24  ;;  %s10552_s24 = smov 54  }
  0x22   : > { %907 = vrot.lane.b32.xlu1 %v10608_v1, %s10533_s25  ;;  %905 = vrot.lane.b32.xlu0 %v10630_v6, %s10533_s25 }
  0x26   : > { %909 = vrot.lane.b32.xlu1 %v10617_v3, %s10533_s25  ;;  %903 = vrot.lane.b32.xlu0 %v10611_v2, %s10533_s25 }
  0x2a   : > { %913 = vrot.lane.b32.xlu1 %v10626_v5, %s10533_s25  ;;  %911 = vrot.lane.b32.xlu0 %v10620_v4, %s10533_s25 }
  0x2e   : > { %917 = vrot.lane.b32.xlu1 %v10639_v8, %s10533_s25  ;;  %915 = vrot.lane.b32.xlu0 %v10633_v7, %s10533_s25 }
  0x32   : > { %1252 = vrot.lane.b32.xlu1 %v10608_v1, %s10534_s26  ;;  %1250 = vrot.lane.b32.xlu0 %v10630_v6, %s10534_s26 }
  0x36   : > { %1254 = vrot.lane.b32.xlu1 %v10617_v3, %s10534_s26  ;;  %1248 = vrot.lane.b32.xlu0 %v10611_v2, %s10534_s26 }
  0x3a   : > { %1258 = vrot.lane.b32.xlu1 %v10626_v5, %s10534_s26  ;;  %1256 = vrot.lane.b32.xlu0 %v10620_v4, %s10534_s26 }
  0x3e   : > { %1262 = vrot.lane.b32.xlu1 %v10639_v8, %s10534_s26  ;;  %1260 = vrot.lane.b32.xlu0 %v10633_v7, %s10534_s26  ;;  %s10545_s26 = smov 17  }
  0x42   : > { %1597 = vrot.lane.b32.xlu1 %v10608_v1, %s10535_s27  ;;  %1595 = vrot.lane.b32.xlu0 %v10630_v6, %s10535_s27 }
  0x46   : > { %1599 = vrot.lane.b32.xlu1 %v10617_v3, %s10535_s27  ;;  %1593 = vrot.lane.b32.xlu0 %v10611_v2, %s10535_s27 }
  0x4a   : > { %1603 = vrot.lane.b32.xlu1 %v10626_v5, %s10535_s27  ;;  %1601 = vrot.lane.b32.xlu0 %v10620_v4, %s10535_s27 }
  0x4e   : > { %1607 = vrot.lane.b32.xlu1 %v10639_v8, %s10535_s27  ;;  %1605 = vrot.lane.b32.xlu0 %v10633_v7, %s10535_s27  ;;  %s10553_s27 = smov 46  }
  0x52   : > { %1942 = vrot.lane.b32.xlu1 %v10608_v1, %s10536_s28  ;;  %1940 = vrot.lane.b32.xlu0 %v10630_v6, %s10536_s28 }
  0x56   : > { %1944 = vrot.lane.b32.xlu1 %v10617_v3, %s10536_s28  ;;  %1938 = vrot.lane.b32.xlu0 %v10611_v2, %s10536_s28 }
  0x5a   : > { %1948 = vrot.lane.b32.xlu1 %v10626_v5, %s10536_s28  ;;  %1946 = vrot.lane.b32.xlu0 %v10620_v4, %s10536_s28 }
  0x5e   : > { %1952 = vrot.lane.b32.xlu1 %v10639_v8, %s10536_s28  ;;  %1950 = vrot.lane.b32.xlu0 %v10633_v7, %s10536_s28 }
  0x62   : > { %2287 = vrot.lane.b32.xlu1 %v10608_v1, %s10537_s29  ;;  %2285 = vrot.lane.b32.xlu0 %v10630_v6, %s10537_s29 }
  0x66   : > { %2289 = vrot.lane.b32.xlu1 %v10617_v3, %s10537_s29  ;;  %2283 = vrot.lane.b32.xlu0 %v10611_v2, %s10537_s29 }
  0x6a   : > { %2293 = vrot.lane.b32.xlu1 %v10626_v5, %s10537_s29  ;;  %2291 = vrot.lane.b32.xlu0 %v10620_v4, %s10537_s29 }
  0x6e   : > { %2297 = vrot.lane.b32.xlu1 %v10639_v8, %s10537_s29  ;;  %2295 = vrot.lane.b32.xlu0 %v10633_v7, %s10537_s29  ;;  %s10546_s29 = smov 16  }
  0x72   : > { %2632 = vrot.lane.b32.xlu1 %v10608_v1, %s10538_s30  ;;  %2630 = vrot.lane.b32.xlu0 %v10630_v6, %s10538_s30 }
  0x76   : > { %2634 = vrot.lane.b32.xlu1 %v10617_v3, %s10538_s30  ;;  %2628 = vrot.lane.b32.xlu0 %v10611_v2, %s10538_s30 }
  0x7a   : > { %2638 = vrot.lane.b32.xlu1 %v10626_v5, %s10538_s30  ;;  %2636 = vrot.lane.b32.xlu0 %v10620_v4, %s10538_s30 }
  0x7e   : > { %2642 = vrot.lane.b32.xlu1 %v10639_v8, %s10538_s30  ;;  %2640 = vrot.lane.b32.xlu0 %v10633_v7, %s10538_s30  ;;  %s10554_s30 = smov 45  }
  0x82   : > { %2977 = vrot.lane.b32.xlu1 %v10608_v1, %s10539_s6  ;;  %2975 = vrot.lane.b32.xlu0 %v10630_v6, %s10539_s6 }
  0x84   : > { %v267_v9 = vpop.permute.xlu0 %266  ;;  %v263_v10 = vpop.permute.xlu1 %262 }
  0x86   : > { %2979 = vrot.lane.b32.xlu1 %v10617_v3, %s10539_s6  ;;  %2973 = vrot.lane.b32.xlu0 %v10611_v2, %s10539_s6 }
  0x88   : > { %v271_v11 = vpop.permute.xlu0 %270  ;;  %v269_v12 = vpop.permute.xlu1 %268 }
  0x89   : > { %v282_v13 = vsel %vm278_vm0, %v269_v12, %v271_v11  ;;  %v281_v14 = vsel %vm278_vm0, %v267_v9, %v269_v12 }
  0x8a   : > { %2983 = vrot.lane.b32.xlu1 %v10626_v5, %s10539_s6  ;;  %9747 = vmatprep.subr.msk.mxu1 %vm290_vm1, %v282_v13 }
  0x8b   : > { %2981 = vrot.lane.b32.xlu0 %v10620_v4, %s10539_s6  ;;  %9748 = vmatpush1.msk.msra.mxu1 %vm290_vm1, %v281_v14 }
  0x8c   : > { %v273_v16 = vpop.permute.xlu1 %272  ;;  %v265_v17 = vpop.permute.xlu0 %264  ;;  %10130 = vmatprep.subr.mxu1 %v10531_v0  ;;  %9749 = vmatmul.mubr.msk.f32.vlgmr.msra.gmra.mrb[0].mxu1 %vm286_vm2, %v9743_v15 }
  0x8d   : > { %v280_v18 = vsel %vm278_vm0, %v265_v17, %v267_v9  ;;  %v279_v19 = vsel %vm278_vm0, %v263_v10, %v265_v17  ;;  %10132 = vmatprep.mubr.msk.f32.mxu1 %vm10540_vm3, %v10531_v0  ;;  %v283_v24 = vsel %vm278_vm0, %v271_v11, %v273_v16  ;;  %v9790_v9 = vld [vmem:[%s11720_s1 + $0x20] sm:$0xff] }
  0x8e   : > { %2987 = vrot.lane.b32.xlu1 %v10639_v8, %s10539_s6  ;;  %9744 = vmatprep.subr.msk.mxu0 %vm290_vm1, %v280_v18 }
  0x8f   : > { %2985 = vrot.lane.b32.xlu0 %v10633_v7, %s10539_s6  ;;  %9745 = vmatpush1.msk.msra.mxu0 %vm290_vm1, %v279_v19 }
  0x90   : > { %v277_v20 = vpop.permute.xlu1 %276  ;;  %9746 = vmatmul.mubr.msk.f32.vlgmr.msra.gmra.mrb[0].mxu0 %vm286_vm2, %v9743_v15  ;;  %v275_v21 = vpop.permute.xlu0 %274 }
  0x91   : > { %v285_v22 = vsel %vm278_vm0, %v275_v21, %v277_v20  ;;  %v284_v23 = vsel %vm278_vm0, %v273_v16, %v275_v21  ;;  %511 = vmatprep.mubr.f32.mxu0 %v10531_v0  ;;  %vm5059_vm0 = vcmask 130048  }
  0x92   : > { %3322 = vrot.lane.b32.xlu1 %v10608_v1, %s10541_s9  ;;  %9750 = vmatprep.subr.msk.mxu0 %vm290_vm1, %v284_v23 }
  0x93   : > { %3320 = vrot.lane.b32.xlu0 %v10630_v6, %s10541_s9  ;;  %10131 = vmatpush3.msk.msra.mxu1 %vm290_vm1, %v285_v22 }
  0x94   : > { %9751 = vmatpush1.msk.msra.mxu0 %vm290_vm1, %v283_v24  ;;  %v908_v25 = vpop.permute.xlu1 %907  ;;  %v906_v26 = vpop.permute.xlu0 %905  ;;  %10133 = vmatmul.mubr.msk.f32.vlgmr.msra.gmra.mrb[2].mxu1 %vm286_vm2, %v9743_v15 }
  0x95   : > { %9752 = vmatmul.mubr.msk.f32.vlgmr.msra.gmra.mrb[2].mxu0 %vm286_vm2, %v9743_v15  ;;  %9755 = vmatprep.subr.msk.mxu0 %vm290_vm1, %v10630_v6  ;;  %v921_v30 = vsel %vm919_vm4, %v906_v26, %v908_v25 }
  0x96   : > { %3324 = vrot.lane.b32.xlu1 %v10617_v3, %s10541_s9  ;;  %9756 = vmatpush1.msk.msra.mxu0 %vm290_vm1, %v10611_v2 }
  0x97   : > { %3318 = vrot.lane.b32.xlu0 %v10611_v2, %s10541_s9  ;;  %670 = vmatprep.mubr.f32.mxu0 %v10531_v0 }
  0x98   : > { %9761 = vmatprep.subr.msk.mxu0 %vm290_vm1, %v10626_v5  ;;  %v910_v28 = vpop.permute.xlu1 %909  ;;  %9758 = vmatprep.subr.msk.mxu1 %vm290_vm1, %v10617_v3  ;;  %v904_v29 = vpop.permute.xlu0 %903 }
  0x99   : > { %9757 = vmatmul.mubr.msk.f32.vlgmr.msra.gmra.mrb[0].mxu0 %vm286_vm2, %v250_v27  ;;  %9759 = vmatpush1.msk.msra.mxu1 %vm290_vm1, %v10608_v1  ;;  %v920_v34 = vsel %vm919_vm4, %v904_v29, %v906_v26  ;;  %v922_v38 = vsel %vm919_vm4, %v908_v25, %v910_v28  ;;  %v9802_v25 = vld [vmem:[%s11720_s1 + $0x28] sm:$0xff] }
  0x9a   : > { %9762 = vmatpush1.msk.msra.mxu0 %vm290_vm1, %v10620_v4  ;;  %741 = vmatprep.mubr.f32.mxu1 %v10531_v0 }
  0x9b   : > { %9767 = vmatprep.subr.msk.mxu0 %vm290_vm1, %v921_v30  ;;  %3328 = vrot.lane.b32.xlu1 %v10626_v5, %s10541_s9 }
  0x9c   : > { %3326 = vrot.lane.b32.xlu0 %v10620_v4, %s10541_s9  ;;  %9760 = vmatmul.mubr.msk.f32.vlgmr.msra.gmra.mrb[0].mxu1 %vm286_vm2, %v250_v27  ;;  %v914_v32 = vpop.permute.xlu1 %913  ;;  %v912_v33 = vpop.permute.xlu0 %911 }
  0x9d   : > { %812 = vmatprep.mubr.f32.mxu0 %v10531_v0  ;;  %10135 = vmatprep.subr.mxu1 %v10531_v0  ;;  %v923_v35 = vsel %vm919_vm4, %v910_v28, %v912_v33  ;;  %v924_v44 = vsel %vm919_vm4, %v912_v33, %v914_v32 }
  0x9e   : > { %9763 = vmatmul.mubr.msk.f32.vlgmr.msra.gmra.mrb[2].mxu0 %vm286_vm2, %v250_v27  ;;  %10136 = vmatpush3.msk.msra.mxu1 %vm290_vm1, %v249_v31 }
  0x9f   : > { %9768 = vmatpush1.msk.msra.mxu0 %vm290_vm1, %v920_v34  ;;  %10137 = vmatprep.mubr.msk.f32.mxu1 %vm10540_vm3, %v10531_v0 }
  0xa0   : > { %3332 = vrot.lane.b32.xlu1 %v10639_v8, %s10541_s9  ;;  %3330 = vrot.lane.b32.xlu0 %v10633_v7, %s10541_s9  ;;  %v918_v36 = vpop.permute.xlu1 %917  ;;  %v916_v37 = vpop.permute.xlu0 %915 }
  0xa1   : > { %10138 = vmatmul.mubr.msk.f32.vlgmr.msra.gmra.mrb[2].mxu1 %vm286_vm2, %v250_v27  ;;  %9770 = vmatprep.subr.msk.mxu1 %vm290_vm1, %v923_v35  ;;  %v925_v40 = vsel %vm919_vm4, %v914_v32, %v916_v37  ;;  %v926_v41 = vsel %vm919_vm4, %v916_v37, %v918_v36  ;;  %vm5404_vm4 = vcmask 64512  }
  0xa2   : > { %9771 = vmatpush1.msk.msra.mxu1 %vm290_vm1, %v922_v38  ;;  %1079 = vmatprep.mubr.f32.mxu1 %v10531_v0 }
  0xa3   : > { %10140 = vmatprep.subr.mxu1 %v10531_v0  ;;  %1008 = vmatprep.mubr.f32.mxu0 %v10531_v0 }
  0xa4   : > { %3667 = vrot.lane.b32.xlu1 %v10608_v1, %s10542_s14  ;;  %3665 = vrot.lane.b32.xlu0 %v10630_v6, %s10542_s14  ;;  %v1253_v42 = vpop.permute.xlu1 %1252  ;;  %v1251_v43 = vpop.permute.xlu0 %1250 }
  0xa5   : > { %9772 = vmatmul.mubr.msk.f32.vlgmr.msra.gmra.mrb[0].mxu1 %vm286_vm2, %v9766_v39  ;;  %9773 = vmatprep.subr.msk.mxu0 %vm290_vm1, %v925_v40  ;;  %v1266_v45 = vsel %vm1264_vm5, %v1251_v43, %v1253_v42 }
  0xa6   : > { %10141 = vmatpush3.msk.msra.mxu1 %vm290_vm1, %v926_v41  ;;  %9769 = vmatmul.mubr.msk.f32.vlgmr.msra.gmra.mrb[0].mxu0 %vm286_vm2, %v9766_v39  ;;  %v9814_v41 = vld [vmem:[%s11720_s1 + $0x30] sm:$0xff] }
  0xa7   : > { %9774 = vmatpush1.msk.msra.mxu0 %vm290_vm1, %v924_v44  ;;  %1150 = vmatprep.mubr.f32.mxu0 %v10531_v0 }
  0xa8   : > { %3669 = vrot.lane.b32.xlu1 %v10617_v3, %s10542_s14  ;;  %3663 = vrot.lane.b32.xlu0 %v10611_v2, %s10542_s14  ;;  %v1255_v46 = vpop.permute.xlu1 %1254  ;;  %v1249_v47 = vpop.permute.xlu0 %1248 }
  0xa9   : > { %9779 = vmatprep.subr.msk.mxu0 %vm290_vm1, %v1266_v45  ;;  %v1265_v48 = vsel %vm1264_vm5, %v1249_v47, %v1251_v43  ;;  %10142 = vmatprep.mubr.msk.f32.mxu1 %vm10540_vm3, %v10531_v0  ;;  %v1267_v53 = vsel %vm1264_vm5, %v1253_v42, %v1255_v46 }
  0xaa   : > { %9775 = vmatmul.mubr.msk.f32.vlgmr.msra.gmra.mrb[2].mxu0 %vm286_vm2, %v9766_v39  ;;  %10143 = vmatmul.mubr.msk.f32.vlgmr.msra.gmra.mrb[2].mxu1 %vm286_vm2, %v9766_v39 }
  0xab   : > { %9780 = vmatpush1.msk.msra.mxu0 %vm290_vm1, %v1265_v48  ;;  %1424 = vmatprep.mubr.f32.mxu1 %v10531_v0 }
  0xac   : > { %3673 = vrot.lane.b32.xlu1 %v10626_v5, %s10542_s14  ;;  %3671 = vrot.lane.b32.xlu0 %v10620_v4, %s10542_s14  ;;  %v1259_v50 = vpop.permute.xlu1 %1258  ;;  %v1257_v51 = vpop.permute.xlu0 %1256 }
  0xad   : > { %v1268_v52 = vsel %vm1264_vm5, %v1255_v46, %v1257_v51  ;;  %1353 = vmatprep.mubr.f32.mxu0 %v10531_v0  ;;  %v1269_v58 = vsel %vm1264_vm5, %v1257_v51, %v1259_v50 }
  0xae   : > { %9782 = vmatprep.subr.msk.mxu1 %vm290_vm1, %v1268_v52  ;;  %9781 = vmatmul.mubr.msk.f32.vlgmr.msra.gmra.mrb[0].mxu0 %vm286_vm2, %v9778_v49 }
  0xaf   : > { %9783 = vmatpush1.msk.msra.mxu1 %vm290_vm1, %v1267_v53  ;;  %1495 = vmatprep.mubr.f32.mxu0 %v10531_v0 }
  0xb0   : > { %3677 = vrot.lane.b32.xlu1 %v10639_v8, %s10542_s14  ;;  %3675 = vrot.lane.b32.xlu0 %v10633_v7, %s10542_s14  ;;  %v1263_v54 = vpop.permute.xlu1 %1262  ;;  %v1261_v55 = vpop.permute.xlu0 %1260  ;;  %s10557_s14 = smov 35  }
  0xb1   : > { %v1271_v56 = vsel %vm1264_vm5, %v1261_v55, %v1263_v54  ;;  %10145 = vmatprep.subr.mxu1 %v10531_v0  ;;  %9784 = vmatmul.mubr.msk.f32.vlgmr.msra.gmra.mrb[0].mxu1 %vm286_vm2, %v9778_v49  ;;  %v1270_v57 = vsel %vm1264_vm5, %v1259_v50, %v1261_v55  ;;  %vm5749_vm5 = vcmask 56320  }
  0xb2   : > { %9785 = vmatprep.subr.msk.mxu0 %vm290_vm1, %v1270_v57  ;;  %10146 = vmatpush3.msk.msra.mxu1 %vm290_vm1, %v1271_v56  ;;  %v9826_v57 = vld [vmem:[%s11720_s1 + $0x38] sm:$0xff] }
  0xb3   : > { %9786 = vmatpush1.msk.msra.mxu0 %vm290_vm1, %v1269_v58  ;;  %10147 = vmatprep.mubr.msk.f32.mxu1 %vm10540_vm3, %v10531_v0 }
  0xb4   : > { %4012 = vrot.lane.b32.xlu1 %v10608_v1, %s10543_s17  ;;  %4010 = vrot.lane.b32.xlu0 %v10630_v6, %s10543_s17  ;;  %v1598_v59 = vpop.permute.xlu1 %1597  ;;  %v1596_v60 = vpop.permute.xlu0 %1595 }
  0xb5   : > { %v1611_v61 = vsel %vm1609_vm6, %v1596_v60, %v1598_v59  ;;  %9787 = vmatmul.mubr.msk.f32.vlgmr.msra.gmra.mrb[2].mxu0 %vm286_vm2, %v9778_v49  ;;  %10148 = vmatmul.mubr.msk.f32.vlgmr.msra.gmra.mrb[2].mxu1 %vm286_vm2, %v9778_v49 }
  0xb6   : > { %9791 = vmatprep.subr.msk.mxu0 %vm290_vm1, %v1611_v61  ;;  %1769 = vmatprep.mubr.f32.mxu1 %v10531_v0 }
  0xb7   : > { %1698 = vmatprep.mubr.f32.mxu0 %v10531_v0 }
  0xb8   : > { %4014 = vrot.lane.b32.xlu1 %v10617_v3, %s10543_s17  ;;  %4008 = vrot.lane.b32.xlu0 %v10611_v2, %s10543_s17  ;;  %v1600_v62 = vpop.permute.xlu1 %1599  ;;  %v1594_v63 = vpop.permute.xlu0 %1593 }
  0xb9   : > { %v1610_v10 = vsel %vm1609_vm6, %v1594_v63, %v1596_v60  ;;  %v1612_v14 = vsel %vm1609_vm6, %v1598_v59, %v1600_v62 }
  0xba   : > { %9792 = vmatpush1.msk.msra.mxu0 %vm290_vm1, %v1610_v10 }
  0xbb   : > { %9793 = vmatmul.mubr.msk.f32.vlgmr.msra.gmra.mrb[0].mxu0 %vm286_vm2, %v9790_v9 }
  0xbc   : > { %4018 = vrot.lane.b32.xlu1 %v10626_v5, %s10543_s17  ;;  %4016 = vrot.lane.b32.xlu0 %v10620_v4, %s10543_s17  ;;  %v1604_v11 = vpop.permute.xlu1 %1603  ;;  %v1602_v12 = vpop.permute.xlu0 %1601 }
  0xbd   : > { %v1613_v13 = vsel %vm1609_vm6, %v1600_v62, %v1602_v12  ;;  %1840 = vmatprep.mubr.f32.mxu0 %v10531_v0  ;;  %v1614_v19 = vsel %vm1609_vm6, %v1602_v12, %v1604_v11 }
  0xbe   : > { %9794 = vmatprep.subr.msk.mxu1 %vm290_vm1, %v1613_v13 }
  0xbf   : > { %9795 = vmatpush1.msk.msra.mxu1 %vm290_vm1, %v1612_v14 }
  0xc0   : > { %4022 = vrot.lane.b32.xlu1 %v10639_v8, %s10543_s17  ;;  %4020 = vrot.lane.b32.xlu0 %v10633_v7, %s10543_s17  ;;  %v1608_v15 = vpop.permute.xlu1 %1607  ;;  %v1606_v16 = vpop.permute.xlu0 %1605  ;;  %s10558_s17 = smov 34  }
  0xc1   : > { %v1616_v17 = vsel %vm1609_vm6, %v1606_v16, %v1608_v15  ;;  %10150 = vmatprep.subr.mxu1 %v10531_v0  ;;  %9796 = vmatmul.mubr.msk.f32.vlgmr.msra.gmra.mrb[0].mxu1 %vm286_vm2, %v9790_v9  ;;  %v1615_v18 = vsel %vm1609_vm6, %v1604_v11, %v1606_v16  ;;  %v9838_v16 = vld [vmem:[%s11720_s1 + $0x40] sm:$0xff]  ;;  %vm6094_vm6 = vcmask 48128  }
  0xc2   : > { %9797 = vmatprep.subr.msk.mxu0 %vm290_vm1, %v1615_v18  ;;  %10151 = vmatpush3.msk.msra.mxu1 %vm290_vm1, %v1616_v17 }
  0xc3   : > { %9798 = vmatpush1.msk.msra.mxu0 %vm290_vm1, %v1614_v19  ;;  %10152 = vmatprep.mubr.msk.f32.mxu1 %vm10540_vm3, %v10531_v0 }
  0xc4   : > { %4357 = vrot.lane.b32.xlu1 %v10608_v1, %s10544_s22  ;;  %4355 = vrot.lane.b32.xlu0 %v10630_v6, %s10544_s22  ;;  %v1943_v20 = vpop.permute.xlu1 %1942  ;;  %v1941_v21 = vpop.permute.xlu0 %1940 }
  0xc5   : > { %v1956_v22 = vsel %vm1954_vm7, %v1941_v21, %v1943_v20  ;;  %9799 = vmatmul.mubr.msk.f32.vlgmr.msra.gmra.mrb[2].mxu0 %vm286_vm2, %v9790_v9  ;;  %10153 = vmatmul.mubr.msk.f32.vlgmr.msra.gmra.mrb[2].mxu1 %vm286_vm2, %v9790_v9 }
  0xc6   : > { %9803 = vmatprep.subr.msk.mxu0 %vm290_vm1, %v1956_v22  ;;  %2114 = vmatprep.mubr.f32.mxu1 %v10531_v0  ;;  %v5720_v22 = vld [vmem:[%s10603_s23 + $0x8] sm:$0xff] }
  0xc7   : > { %2043 = vmatprep.mubr.f32.mxu0 %v10531_v0 }
  0xc8   : > { %4359 = vrot.lane.b32.xlu1 %v10617_v3, %s10544_s22  ;;  %4353 = vrot.lane.b32.xlu0 %v10611_v2, %s10544_s22  ;;  %v1945_v23 = vpop.permute.xlu1 %1944  ;;  %v1939_v24 = vpop.permute.xlu0 %1938 }
  0xc9   : > { %v1955_v26 = vsel %vm1954_vm7, %v1939_v24, %v1941_v21  ;;  %v1957_v30 = vsel %vm1954_vm7, %v1943_v20, %v1945_v23 }
  0xca   : > { %9804 = vmatpush1.msk.msra.mxu0 %vm290_vm1, %v1955_v26 }
  0xcb   : > { %9805 = vmatmul.mubr.msk.f32.vlgmr.msra.gmra.mrb[0].mxu0 %vm286_vm2, %v9802_v25 }
  0xcc   : > { %4363 = vrot.lane.b32.xlu1 %v10626_v5, %s10544_s22  ;;  %4361 = vrot.lane.b32.xlu0 %v10620_v4, %s10544_s22  ;;  %v1949_v27 = vpop.permute.xlu1 %1948  ;;  %v1947_v28 = vpop.permute.xlu0 %1946 }
  0xcd   : > { %v1958_v29 = vsel %vm1954_vm7, %v1945_v23, %v1947_v28  ;;  %2185 = vmatprep.mubr.f32.mxu0 %v10531_v0  ;;  %v1959_v35 = vsel %vm1954_vm7, %v1947_v28, %v1949_v27 }
  0xce   : > { %9806 = vmatprep.subr.msk.mxu1 %vm290_vm1, %v1958_v29 }
  0xcf   : > { %9807 = vmatpush1.msk.msra.mxu1 %vm290_vm1, %v1957_v30 }
  0xd0   : > { %4367 = vrot.lane.b32.xlu1 %v10639_v8, %s10544_s22  ;;  %4365 = vrot.lane.b32.xlu0 %v10633_v7, %s10544_s22  ;;  %v1953_v31 = vpop.permute.xlu1 %1952  ;;  %v1951_v32 = vpop.permute.xlu0 %1950 }
  0xd1   : > { %v1961_v33 = vsel %vm1954_vm7, %v1951_v32, %v1953_v31  ;;  %10155 = vmatprep.subr.mxu1 %v10531_v0  ;;  %9808 = vmatmul.mubr.msk.f32.vlgmr.msra.gmra.mrb[0].mxu1 %vm286_vm2, %v9802_v25  ;;  %v1960_v34 = vsel %vm1954_vm7, %v1949_v27, %v1951_v32  ;;  %v5721_v27 = vld [vmem:[%s10603_s23 + $0x10] sm:$0xff]  ;;  %v5722_v32 = vld [vmem:[%s10603_s23 + $0x18] sm:$0xff]  ;;  %vm6439_vm7 = vcmask 457728  }
  0xd2   : > { %9809 = vmatprep.subr.msk.mxu0 %vm290_vm1, %v1960_v34  ;;  %10156 = vmatpush3.msk.msra.mxu1 %vm290_vm1, %v1961_v33  ;;  %v5731_v30 = vcombine.high %v5721_v27, %v5721_v27  ;;  %v9850_v34 = vld [vmem:[%s11720_s1 + $0x48] sm:$0xff] }
  0xd3   : > { %9810 = vmatpush1.msk.msra.mxu0 %vm290_vm1, %v1959_v35  ;;  %10157 = vmatprep.mubr.msk.f32.mxu1 %vm10540_vm3, %v10531_v0  ;;  %v5732_v35 = vcombine.high %v5722_v32, %v5722_v32 }
  0xd4   : > { %4702 = vrot.lane.b32.xlu1 %v10608_v1, %s10545_s26  ;;  %4700 = vrot.lane.b32.xlu0 %v10630_v6, %s10545_s26  ;;  %v2288_v36 = vpop.permute.xlu1 %2287  ;;  %v2286_v37 = vpop.permute.xlu0 %2285 }
  0xd5   : > { %v2301_v38 = vsel %vm2299_vm8, %v2286_v37, %v2288_v36  ;;  %9811 = vmatmul.mubr.msk.f32.vlgmr.msra.gmra.mrb[2].mxu0 %vm286_vm2, %v9802_v25  ;;  %10158 = vmatmul.mubr.msk.f32.vlgmr.msra.gmra.mrb[2].mxu1 %vm286_vm2, %v9802_v25 }
  0xd6   : > { %9815 = vmatprep.subr.msk.mxu0 %vm290_vm1, %v2301_v38  ;;  %2459 = vmatprep.mubr.f32.mxu1 %v10531_v0 }
  0xd7   : > { %2388 = vmatprep.mubr.f32.mxu0 %v10531_v0 }
  0xd8   : > { %4704 = vrot.lane.b32.xlu1 %v10617_v3, %s10545_s26  ;;  %4698 = vrot.lane.b32.xlu0 %v10611_v2, %s10545_s26  ;;  %v2290_v39 = vpop.permute.xlu1 %2289  ;;  %v2284_v40 = vpop.permute.xlu0 %2283 }
  0xd9   : > { %v2300_v42 = vsel %vm2299_vm8, %v2284_v40, %v2286_v37  ;;  %v2302_v46 = vsel %vm2299_vm8, %v2288_v36, %v2290_v39 }
  0xda   : > { %9816 = vmatpush1.msk.msra.mxu0 %vm290_vm1, %v2300_v42 }
  0xdb   : > { %9817 = vmatmul.mubr.msk.f32.vlgmr.msra.gmra.mrb[0].mxu0 %vm286_vm2, %v9814_v41 }
  0xdc   : > { %4708 = vrot.lane.b32.xlu1 %v10626_v5, %s10545_s26  ;;  %4706 = vrot.lane.b32.xlu0 %v10620_v4, %s10545_s26  ;;  %v2294_v43 = vpop.permute.xlu1 %2293  ;;  %v2292_v44 = vpop.permute.xlu0 %2291 }
  0xdd   : > { %v2303_v45 = vsel %vm2299_vm8, %v2290_v39, %v2292_v44  ;;  %2530 = vmatprep.mubr.f32.mxu0 %v10531_v0  ;;  %v2304_v51 = vsel %vm2299_vm8, %v2292_v44, %v2294_v43 }
  0xde   : > { %9818 = vmatprep.subr.msk.mxu1 %vm290_vm1, %v2303_v45 }
  0xdf   : > { %9819 = vmatpush1.msk.msra.mxu1 %vm290_vm1, %v2302_v46 }
  0xe0   : > { %4712 = vrot.lane.b32.xlu1 %v10639_v8, %s10545_s26  ;;  %4710 = vrot.lane.b32.xlu0 %v10633_v7, %s10545_s26  ;;  %v2298_v47 = vpop.permute.xlu1 %2297  ;;  %v2296_v48 = vpop.permute.xlu0 %2295 }
  0xe1   : > { %v2306_v49 = vsel %vm2299_vm8, %v2296_v48, %v2298_v47  ;;  %10160 = vmatprep.subr.mxu1 %v10531_v0  ;;  %9820 = vmatmul.mubr.msk.f32.vlgmr.msra.gmra.mrb[0].mxu1 %vm286_vm2, %v9814_v41  ;;  %v2305_v50 = vsel %vm2299_vm8, %v2294_v43, %v2296_v48  ;;  %vm6784_vm8 = vcmask 449536  }
  0xe2   : > { %9821 = vmatprep.subr.msk.mxu0 %vm290_vm1, %v2305_v50  ;;  %10161 = vmatpush3.msk.msra.mxu1 %vm290_vm1, %v2306_v49 }
  0xe3   : > { %9822 = vmatpush1.msk.msra.mxu0 %vm290_vm1, %v2304_v51  ;;  %10162 = vmatprep.mubr.msk.f32.mxu1 %vm10540_vm3, %v10531_v0  ;;  %v9862_v51 = vld [vmem:[%s11720_s1 + $0x50] sm:$0xff] }
  0xe4   : > { %5047 = vrot.lane.b32.xlu1 %v10608_v1, %s10546_s29  ;;  %5045 = vrot.lane.b32.xlu0 %v10630_v6, %s10546_s29  ;;  %v2633_v52 = vpop.permute.xlu1 %2632  ;;  %v2631_v53 = vpop.permute.xlu0 %2630 }
  0xe5   : > { %v2646_v54 = vsel %vm2644_vm9, %v2631_v53, %v2633_v52  ;;  %9823 = vmatmul.mubr.msk.f32.vlgmr.msra.gmra.mrb[2].mxu0 %vm286_vm2, %v9814_v41  ;;  %10163 = vmatmul.mubr.msk.f32.vlgmr.msra.gmra.mrb[2].mxu1 %vm286_vm2, %v9814_v41 }
  0xe6   : > { %9827 = vmatprep.subr.msk.mxu0 %vm290_vm1, %v2646_v54  ;;  %2804 = vmatprep.mubr.f32.mxu1 %v10531_v0 }
  0xe7   : > { %2733 = vmatprep.mubr.f32.mxu0 %v10531_v0 }
  0xe8   : > { %5049 = vrot.lane.b32.xlu1 %v10617_v3, %s10546_s29  ;;  %5043 = vrot.lane.b32.xlu0 %v10611_v2, %s10546_s29  ;;  %v2635_v55 = vpop.permute.xlu1 %2634  ;;  %v2629_v56 = vpop.permute.xlu0 %2628 }
  0xe9   : > { %v2645_v58 = vsel %vm2644_vm9, %v2629_v56, %v2631_v53  ;;  %v2647_v62 = vsel %vm2644_vm9, %v2633_v52, %v2635_v55  ;;  %v11073_v52 = vld [vmem:[%s10603_s23 + $0x4] sm:$0xff] }
  0xea   : > { %9828 = vmatpush1.msk.msra.mxu0 %vm290_vm1, %v2645_v58  ;;  %v11082_v56 = vcombine.high %v11073_v52, %v11073_v52  ;;  %v11087_v58 = vld [vmem:[%s10603_s23 + $0xc] sm:$0xff] }
  0xeb   : > { %9829 = vmatmul.mubr.msk.f32.vlgmr.msra.gmra.mrb[0].mxu0 %vm286_vm2, %v9826_v57 }
  0xec   : > { %5053 = vrot.lane.b32.xlu1 %v10626_v5, %s10546_s29  ;;  %5051 = vrot.lane.b32.xlu0 %v10620_v4, %s10546_s29  ;;  %v2639_v59 = vpop.permute.xlu1 %2638  ;;  %v2637_v60 = vpop.permute.xlu0 %2636 }
  0xed   : > { %v2648_v61 = vsel %vm2644_vm9, %v2635_v55, %v2637_v60  ;;  %2875 = vmatprep.mubr.f32.mxu0 %v10531_v0  ;;  %v2649_v12 = vsel %vm2644_vm9, %v2637_v60, %v2639_v59 }
  0xee   : > { %9830 = vmatprep.subr.msk.mxu1 %vm290_vm1, %v2648_v61 }
  0xef   : > { %9831 = vmatpush1.msk.msra.mxu1 %vm290_vm1, %v2647_v62 }
  0xf0   : > { %5057 = vrot.lane.b32.xlu1 %v10639_v8, %s10546_s29  ;;  %5055 = vrot.lane.b32.xlu0 %v10633_v7, %s10546_s29  ;;  %v2643_v63 = vpop.permute.xlu1 %2642  ;;  %v2641_v9 = vpop.permute.xlu0 %2640 }
  0xf1   : > { %v2651_v10 = vsel %vm2644_vm9, %v2641_v9, %v2643_v63  ;;  %10165 = vmatprep.subr.mxu1 %v10531_v0  ;;  %9832 = vmatmul.mubr.msk.f32.vlgmr.msra.gmra.mrb[0].mxu1 %vm286_vm2, %v9826_v57  ;;  %v2650_v11 = vsel %vm2644_vm9, %v2639_v59, %v2641_v9  ;;  %v11096_v63 = vcombine.high %v11087_v58, %v11087_v58  ;;  %vm7129_vm9 = vcmask 441344  }
  0xf2   : > { %9833 = vmatprep.subr.msk.mxu0 %vm290_vm1, %v2650_v11  ;;  %10166 = vmatpush3.msk.msra.mxu1 %vm290_vm1, %v2651_v10  ;;  %v11106_v10 = vld [vmem:[%s10603_s23 + $0x14] sm:$0xff] }
  0xf3   : > { %9834 = vmatpush1.msk.msra.mxu0 %vm290_vm1, %v2649_v12  ;;  %10167 = vmatprep.mubr.msk.f32.mxu1 %vm10540_vm3, %v10531_v0 }
  0xf4   : > { %5392 = vrot.lane.b32.xlu1 %v10608_v1, %s10547_s7  ;;  %5390 = vrot.lane.b32.xlu0 %v10630_v6, %s10547_s7  ;;  %v2978_v13 = vpop.permute.xlu1 %2977  ;;  %v2976_v14 = vpop.permute.xlu0 %2975 }
  0xf5   : > { %v2991_v15 = vsel %vm2989_vm10, %v2976_v14, %v2978_v13  ;;  %9835 = vmatmul.mubr.msk.f32.vlgmr.msra.gmra.mrb[2].mxu0 %vm286_vm2, %v9826_v57  ;;  %10168 = vmatmul.mubr.msk.f32.vlgmr.msra.gmra.mrb[2].mxu1 %vm286_vm2, %v9826_v57 }
  0xf6   : > { %9839 = vmatprep.subr.msk.mxu0 %vm290_vm1, %v2991_v15  ;;  %3149 = vmatprep.mubr.f32.mxu1 %v10531_v0  ;;  %v11124_v15 = vld [vmem:[%s10603_s23 + $0x1c] sm:$0xff] }
  0xf7   : > { %3078 = vmatprep.mubr.f32.mxu0 %v10531_v0 }
  0xf8   : > { %5394 = vrot.lane.b32.xlu1 %v10617_v3, %s10547_s7  ;;  %5388 = vrot.lane.b32.xlu0 %v10611_v2, %s10547_s7  ;;  %v2980_v1 = vpop.permute.xlu1 %2979  ;;  %v2974_v6 = vpop.permute.xlu0 %2973  ;;  %v10994_v2 = vld [vmem:[%s10603_s23] sm:$0xff]  ;;  %s10551_s23 = smov 55  }
  0xf9   : > { %v2990_v17 = vsel %vm2989_vm10, %v2974_v6, %v2976_v14  ;;  %v2992_v20 = vsel %vm2989_vm10, %v2978_v13, %v2980_v1  ;;  %v11120_v14 = vcombine.high %v11106_v10, %v11106_v10 }
  0xfa   : > { %9840 = vmatpush1.msk.msra.mxu0 %vm290_vm1, %v2990_v17  ;;  %v9874_v17 = vld [vmem:[%s11720_s1 + $0x58] sm:$0xff] }
  0xfb   : > { %9841 = vmatmul.mubr.msk.f32.vlgmr.msra.gmra.mrb[0].mxu0 %vm286_vm2, %v9838_v16 }
  0xfc   : > { %5398 = vrot.lane.b32.xlu1 %v10626_v5, %s10547_s7  ;;  %5396 = vrot.lane.b32.xlu0 %v10620_v4, %s10547_s7  ;;  %v2984_v3 = vpop.permute.xlu1 %2983  ;;  %v5729_v4 = vcombine.high %v10994_v2, %v10994_v2 }
  0xfd   : > { %v2982_v18 = vpop.permute.xlu0 %2981  ;;  %3220 = vmatprep.mubr.f32.mxu0 %v10531_v0 }
  0xfe   : > { %v2993_v19 = vsel %vm2989_vm10, %v2980_v1, %v2982_v18 }
  0xff   : > { %9842 = vmatprep.subr.msk.mxu1 %vm290_vm1, %v2993_v19 }
 0x100   : > { %5402 = vrot.lane.b32.xlu1 %v10639_v8, %s10547_s7  ;;  %5400 = vrot.lane.b32.xlu0 %v10633_v7, %s10547_s7  ;;  %v2988_v21 = vpop.permute.xlu1 %2987  ;;  %v2994_v7 = vsel %vm2989_vm10, %v2982_v18, %v2984_v3  ;;  %v5730_v8 = vcombine.high %v5720_v22, %v5720_v22 }
 0x101   : > { %9843 = vmatpush1.msk.msra.mxu1 %vm290_vm1, %v2992_v20  ;;  %v2986_v5 = vpop.permute.xlu0 %2985 }
 0x102   : > { %v2996_v23 = vsel %vm2989_vm10, %v2986_v5, %v2988_v21  ;;  %10170 = vmatprep.subr.mxu1 %v10531_v0  ;;  %9844 = vmatmul.mubr.msk.f32.vlgmr.msra.gmra.mrb[0].mxu1 %vm286_vm2, %v9838_v16  ;;  %v2995_v24 = vsel %vm2989_vm10, %v2984_v3, %v2986_v5  ;;  %v11138_v3 = vcombine.high %v11124_v15, %v11124_v15  ;;  %vm7474_vm10 = vcmask 375808  }
 0x103   : > { %9845 = vmatprep.subr.msk.mxu0 %vm290_vm1, %v2995_v24  ;;  %10171 = vmatpush3.msk.msra.mxu1 %vm290_vm1, %v2996_v23 }
 0x104   : > { %5737 = vrot.lane.b32.xlu1 %v5720_v22, %s10548_s10  ;;  %5735 = vrot.lane.b32.xlu0 %v5729_v4, %s10548_s10  ;;  %v3323_v25 = vpop.permute.xlu1 %3322 }
 0x105   : > { %9846 = vmatpush1.msk.msra.mxu0 %vm290_vm1, %v2994_v7  ;;  %v3321_v26 = vpop.permute.xlu0 %3320  ;;  %10172 = vmatprep.mubr.msk.f32.mxu1 %vm10540_vm3, %v10531_v0 }
 0x106   : > { %v3336_v28 = vsel %vm3334_vm11, %v3321_v26, %v3323_v25  ;;  %9847 = vmatmul.mubr.msk.f32.vlgmr.msra.gmra.mrb[2].mxu0 %vm286_vm2, %v9838_v16  ;;  %10173 = vmatmul.mubr.msk.f32.vlgmr.msra.gmra.mrb[2].mxu1 %vm286_vm2, %v9838_v16 }
 0x107   : > { %9851 = vmatprep.subr.msk.mxu0 %vm290_vm1, %v3336_v28  ;;  %3494 = vmatprep.mubr.f32.mxu1 %v10531_v0  ;;  %v9886_v28 = vld [vmem:[%s11720_s1 + $0x60] sm:$0xff] }
 0x108   : > { %5739 = vrot.lane.b32.xlu1 %v5730_v8, %s10548_s10  ;;  %5733 = vrot.lane.b32.xlu0 %v10994_v2, %s10548_s10  ;;  %v3325_v29 = vpop.permute.xlu1 %3324 }
 0x109   : > { %v3319_v31 = vpop.permute.xlu0 %3318  ;;  %3423 = vmatprep.mubr.f32.mxu0 %v10531_v0  ;;  %v3337_v39 = vsel %vm3334_vm11, %v3323_v25, %v3325_v29 }
 0x10a   : > { %v3335_v33 = vsel %vm3334_vm11, %v3319_v31, %v3321_v26 }
 0x10b   : > { %9852 = vmatpush1.msk.msra.mxu0 %vm290_vm1, %v3335_v33 }
 0x10c   : > { %5743 = vrot.lane.b32.xlu1 %v5731_v30, %s10548_s10  ;;  %5741 = vrot.lane.b32.xlu0 %v5721_v27, %s10548_s10 }
 0x10d   : > { %v3329_v36 = vpop.permute.xlu1 %3328  ;;  %9853 = vmatmul.mubr.msk.f32.vlgmr.msra.gmra.mrb[0].mxu0 %vm286_vm2, %v9850_v34 }
 0x10e   : > { %v3327_v37 = vpop.permute.xlu0 %3326  ;;  %3565 = vmatprep.mubr.f32.mxu0 %v10531_v0 }
 0x10f   : > { %v3338_v38 = vsel %vm3334_vm11, %v3325_v29, %v3327_v37  ;;  %v3339_v44 = vsel %vm3334_vm11, %v3327_v37, %v3329_v36 }
 0x110   : > { %5747 = vrot.lane.b32.xlu1 %v5732_v35, %s10548_s10  ;;  %5745 = vrot.lane.b32.xlu0 %v5722_v32, %s10548_s10 }
 0x111   : > { %9854 = vmatprep.subr.msk.mxu1 %vm290_vm1, %v3338_v38 }
 0x112   : > { %9855 = vmatpush1.msk.msra.mxu1 %vm290_vm1, %v3337_v39  ;;  %v3333_v40 = vpop.permute.xlu1 %3332  ;;  %v3331_v41 = vpop.permute.xlu0 %3330 }
 0x113   : > { %v3341_v42 = vsel %vm3334_vm11, %v3331_v41, %v3333_v40  ;;  %10175 = vmatprep.subr.mxu1 %v10531_v0  ;;  %9856 = vmatmul.mubr.msk.f32.vlgmr.msra.gmra.mrb[0].mxu1 %vm286_vm2, %v9850_v34  ;;  %v3340_v43 = vsel %vm3334_vm11, %v3329_v36, %v3331_v41  ;;  %vm7819_vm11 = vcmask 367616  }
 0x114   : > { %6082 = vrot.lane.b32.xlu1 %v5720_v22, %s10549_s13  ;;  %6080 = vrot.lane.b32.xlu0 %v5729_v4, %s10549_s13 }
 0x115   : > { %9857 = vmatprep.subr.msk.mxu0 %vm290_vm1, %v3340_v43  ;;  %10176 = vmatpush3.msk.msra.mxu1 %vm290_vm1, %v3341_v42 }
 0x116   : > { %9858 = vmatpush1.msk.msra.mxu0 %vm290_vm1, %v3339_v44  ;;  %v3668_v45 = vpop.permute.xlu1 %3667  ;;  %v3666_v46 = vpop.permute.xlu0 %3665  ;;  %10177 = vmatprep.mubr.msk.f32.mxu1 %vm10540_vm3, %v10531_v0  ;;  %v9898_v44 = vld [vmem:[%s11720_s1 + $0x68] sm:$0xff] }
 0x117   : > { %v3681_v47 = vsel %vm3679_vm12, %v3666_v46, %v3668_v45  ;;  %9859 = vmatmul.mubr.msk.f32.vlgmr.msra.gmra.mrb[2].mxu0 %vm286_vm2, %v9850_v34  ;;  %10178 = vmatmul.mubr.msk.f32.vlgmr.msra.gmra.mrb[2].mxu1 %vm286_vm2, %v9850_v34 }
 0x118   : > { %6084 = vrot.lane.b32.xlu1 %v5730_v8, %s10549_s13  ;;  %6078 = vrot.lane.b32.xlu0 %v10994_v2, %s10549_s13 }
 0x119   : > { %9863 = vmatprep.subr.msk.mxu0 %vm290_vm1, %v3681_v47  ;;  %3839 = vmatprep.mubr.f32.mxu1 %v10531_v0 }
 0x11a   : > { %v3670_v48 = vpop.permute.xlu1 %3669  ;;  %v3664_v49 = vpop.permute.xlu0 %3663  ;;  %3768 = vmatprep.mubr.f32.mxu0 %v10531_v0 }
 0x11b   : > { %v3680_v50 = vsel %vm3679_vm12, %v3664_v49, %v3666_v46  ;;  %v3682_v57 = vsel %vm3679_vm12, %v3668_v45, %v3670_v48 }
 0x11c   : > { %6088 = vrot.lane.b32.xlu1 %v5731_v30, %s10549_s13  ;;  %6086 = vrot.lane.b32.xlu0 %v5721_v27, %s10549_s13 }
 0x11d   : > { %9864 = vmatpush1.msk.msra.mxu0 %vm290_vm1, %v3680_v50 }
 0x11e   : > { %v3674_v53 = vpop.permute.xlu1 %3673  ;;  %v3672_v54 = vpop.permute.xlu0 %3671  ;;  %9865 = vmatmul.mubr.msk.f32.vlgmr.msra.gmra.mrb[0].mxu0 %vm286_vm2, %v9862_v51 }
 0x11f   : > { %v3683_v55 = vsel %vm3679_vm12, %v3670_v48, %v3672_v54  ;;  %3910 = vmatprep.mubr.f32.mxu0 %v10531_v0  ;;  %v3684_v9 = vsel %vm3679_vm12, %v3672_v54, %v3674_v53 }
 0x120   : > { %6092 = vrot.lane.b32.xlu1 %v5732_v35, %s10549_s13  ;;  %6090 = vrot.lane.b32.xlu0 %v5722_v32, %s10549_s13  ;;  %s10474_s13 = smul.u32 28, %s11726_s19 }
 0x121   : > { %9866 = vmatprep.subr.msk.mxu1 %vm290_vm1, %v3683_v55 }
 0x122   : > { %9867 = vmatpush1.msk.msra.mxu1 %vm290_vm1, %v3682_v57  ;;  %v3678_v59 = vpop.permute.xlu1 %3677  ;;  %v3676_v60 = vpop.permute.xlu0 %3675 }
 0x123   : > { %v3686_v61 = vsel %vm3679_vm12, %v3676_v60, %v3678_v59  ;;  %10180 = vmatprep.subr.mxu1 %v10531_v0  ;;  %9868 = vmatmul.mubr.msk.f32.vlgmr.msra.gmra.mrb[0].mxu1 %vm286_vm2, %v9862_v51  ;;  %v3685_v62 = vsel %vm3679_vm12, %v3674_v53, %v3676_v60  ;;  %vm8164_vm12 = vcmask 359424  }
 0x124   : > { %6427 = vrot.lane.b32.xlu1 %v11087_v58, %s10550_s16  ;;  %6425 = vrot.lane.b32.xlu0 %v11082_v56, %s10550_s16 }
 0x125   : > { %9869 = vmatprep.subr.msk.mxu0 %vm290_vm1, %v3685_v62  ;;  %10181 = vmatpush3.msk.msra.mxu1 %vm290_vm1, %v3686_v61 }
 0x126   : > { %9870 = vmatpush1.msk.msra.mxu0 %vm290_vm1, %v3684_v9  ;;  %v4013_v11 = vpop.permute.xlu1 %4012  ;;  %v4011_v12 = vpop.permute.xlu0 %4010  ;;  %10182 = vmatprep.mubr.msk.f32.mxu1 %vm10540_vm3, %v10531_v0  ;;  %v9910_v9 = vld [vmem:[%s11720_s1 + $0x70] sm:$0xff] }
 0x127   : > { %v4026_v13 = vsel %vm4024_vm13, %v4011_v12, %v4013_v11  ;;  %9871 = vmatmul.mubr.msk.f32.vlgmr.msra.gmra.mrb[2].mxu0 %vm286_vm2, %v9862_v51  ;;  %10183 = vmatmul.mubr.msk.f32.vlgmr.msra.gmra.mrb[2].mxu1 %vm286_vm2, %v9862_v51 }
 0x128   : > { %6429 = vrot.lane.b32.xlu1 %v11096_v63, %s10550_s16  ;;  %6423 = vrot.lane.b32.xlu0 %v11073_v52, %s10550_s16 }
 0x129   : > { %9875 = vmatprep.subr.msk.mxu0 %vm290_vm1, %v4026_v13  ;;  %4184 = vmatprep.mubr.f32.mxu1 %v10531_v0 }
 0x12a   : > { %v4015_v1 = vpop.permute.xlu1 %4014  ;;  %v4009_v6 = vpop.permute.xlu0 %4008  ;;  %4113 = vmatprep.mubr.f32.mxu0 %v10531_v0 }
 0x12b   : > { %v4025_v16 = vsel %vm4024_vm13, %v4009_v6, %v4011_v12  ;;  %v4027_v20 = vsel %vm4024_vm13, %v4013_v11, %v4015_v1 }
 0x12c   : > { %6433 = vrot.lane.b32.xlu1 %v11120_v14, %s10550_s16  ;;  %6431 = vrot.lane.b32.xlu0 %v11106_v10, %s10550_s16 }
 0x12d   : > { %9876 = vmatpush1.msk.msra.mxu0 %vm290_vm1, %v4025_v16 }
 0x12e   : > { %v4019_v18 = vpop.permute.xlu1 %4018  ;;  %v4017_v2 = vpop.permute.xlu0 %4016  ;;  %9877 = vmatmul.mubr.msk.f32.vlgmr.msra.gmra.mrb[0].mxu0 %vm286_vm2, %v9874_v17 }
 0x12f   : > { %v4028_v19 = vsel %vm4024_vm13, %v4015_v1, %v4017_v2  ;;  %4255 = vmatprep.mubr.f32.mxu0 %v10531_v0  ;;  %v4029_v23 = vsel %vm4024_vm13, %v4017_v2, %v4019_v18 }
 0x130   : > { %6437 = vrot.lane.b32.xlu1 %v11138_v3, %s10550_s16  ;;  %6435 = vrot.lane.b32.xlu0 %v11124_v15, %s10550_s16  ;;  %s11703_s16 = scalar_lea.vmem %s11722_s3, %s10474_s13 }
 0x131   : > { %9878 = vmatprep.subr.msk.mxu1 %vm290_vm1, %v4028_v19 }
 0x132   : > { %9879 = vmatpush1.msk.msra.mxu1 %vm290_vm1, %v4027_v20  ;;  %v4023_v21 = vpop.permute.xlu1 %4022  ;;  %v4021_v4 = vpop.permute.xlu0 %4020 }
 0x133   : > { %v4031_v5 = vsel %vm4024_vm13, %v4021_v4, %v4023_v21  ;;  %10185 = vmatprep.subr.mxu1 %v10531_v0  ;;  %9880 = vmatmul.mubr.msk.f32.vlgmr.msra.gmra.mrb[0].mxu1 %vm286_vm2, %v9874_v17  ;;  %v4030_v22 = vsel %vm4024_vm13, %v4019_v18, %v4021_v4  ;;  %vm8509_vm13 = vcmask 293888  }
 0x134   : > { %6772 = vrot.lane.b32.xlu1 %v11087_v58, %s10551_s23  ;;  %6770 = vrot.lane.b32.xlu0 %v11082_v56, %s10551_s23 }
 0x135   : > { %9881 = vmatprep.subr.msk.mxu0 %vm290_vm1, %v4030_v22  ;;  %10186 = vmatpush3.msk.msra.mxu1 %vm290_vm1, %v4031_v5 }
 0x136   : > { %9882 = vmatpush1.msk.msra.mxu0 %vm290_vm1, %v4029_v23  ;;  %v4358_v24 = vpop.permute.xlu1 %4357  ;;  %v4356_v7 = vpop.permute.xlu0 %4355  ;;  %10187 = vmatprep.mubr.msk.f32.mxu1 %vm10540_vm3, %v10531_v0  ;;  %v9922_v23 = vld [vmem:[%s11720_s1 + $0x78] sm:$0xff] }
 0x137   : > { %v4371_v8 = vsel %vm4369_vm14, %v4356_v7, %v4358_v24  ;;  %9883 = vmatmul.mubr.msk.f32.vlgmr.msra.gmra.mrb[2].mxu0 %vm286_vm2, %v9874_v17  ;;  %10188 = vmatmul.mubr.msk.f32.vlgmr.msra.gmra.mrb[2].mxu1 %vm286_vm2, %v9874_v17 }
 0x138   : > { %6774 = vrot.lane.b32.xlu1 %v11096_v63, %s10551_s23  ;;  %6768 = vrot.lane.b32.xlu0 %v11073_v52, %s10551_s23 }
 0x139   : > { %9887 = vmatprep.subr.msk.mxu0 %vm290_vm1, %v4371_v8  ;;  %4529 = vmatprep.mubr.f32.mxu1 %v10531_v0 }
 0x13a   : > { %v4360_v25 = vpop.permute.xlu1 %4359  ;;  %v4354_v26 = vpop.permute.xlu0 %4353  ;;  %4458 = vmatprep.mubr.f32.mxu0 %v10531_v0 }
 0x13b   : > { %v4370_v27 = vsel %vm4369_vm14, %v4354_v26, %v4356_v7  ;;  %v4372_v32 = vsel %vm4369_vm14, %v4358_v24, %v4360_v25 }
 0x13c   : > { %6778 = vrot.lane.b32.xlu1 %v11120_v14, %s10551_s23  ;;  %6776 = vrot.lane.b32.xlu0 %v11106_v10, %s10551_s23 }
 0x13d   : > { %9888 = vmatpush1.msk.msra.mxu0 %vm290_vm1, %v4370_v27 }
 0x13e   : > { %v4364_v29 = vpop.permute.xlu1 %4363  ;;  %v4362_v30 = vpop.permute.xlu0 %4361  ;;  %9889 = vmatmul.mubr.msk.f32.vlgmr.msra.gmra.mrb[0].mxu0 %vm286_vm2, %v9886_v28 }
 0x13f   : > { %v4373_v31 = vsel %vm4369_vm14, %v4360_v25, %v4362_v30  ;;  %4600 = vmatprep.mubr.f32.mxu0 %v10531_v0  ;;  %v4374_v37 = vsel %vm4369_vm14, %v4362_v30, %v4364_v29 }
 0x140   : > { %6782 = vrot.lane.b32.xlu1 %v11138_v3, %s10551_s23  ;;  %6780 = vrot.lane.b32.xlu0 %v11124_v15, %s10551_s23 }
 0x141   : > { %9890 = vmatprep.subr.msk.mxu1 %vm290_vm1, %v4373_v31 }
 0x142   : > { %9891 = vmatpush1.msk.msra.mxu1 %vm290_vm1, %v4372_v32  ;;  %v4368_v33 = vpop.permute.xlu1 %4367  ;;  %v4366_v34 = vpop.permute.xlu0 %4365 }
 0x143   : > { %v4376_v35 = vsel %vm4369_vm14, %v4366_v34, %v4368_v33  ;;  %10190 = vmatprep.subr.mxu1 %v10531_v0  ;;  %9892 = vmatmul.mubr.msk.f32.vlgmr.msra.gmra.mrb[0].mxu1 %vm286_vm2, %v9886_v28  ;;  %v4375_v36 = vsel %vm4369_vm14, %v4364_v29, %v4366_v34  ;;  %vm8854_vm14 = vcmask 285696  }
 0x144   : > { %7117 = vrot.lane.b32.xlu1 %v11087_v58, %s10552_s24  ;;  %7115 = vrot.lane.b32.xlu0 %v11082_v56, %s10552_s24 }
 0x145   : > { %9893 = vmatprep.subr.msk.mxu0 %vm290_vm1, %v4375_v36  ;;  %10191 = vmatpush3.msk.msra.mxu1 %vm290_vm1, %v4376_v35 }
 0x146   : > { %9894 = vmatpush1.msk.msra.mxu0 %vm290_vm1, %v4374_v37  ;;  %v4703_v38 = vpop.permute.xlu1 %4702  ;;  %v4701_v39 = vpop.permute.xlu0 %4700  ;;  %10192 = vmatprep.mubr.msk.f32.mxu1 %vm10540_vm3, %v10531_v0  ;;  %v9934_v37 = vld [vmem:[%s11720_s1 + $0x80] sm:$0xff] }
 0x147   : > { %v4716_v40 = vsel %vm4714_vm15, %v4701_v39, %v4703_v38  ;;  %9895 = vmatmul.mubr.msk.f32.vlgmr.msra.gmra.mrb[2].mxu0 %vm286_vm2, %v9886_v28  ;;  %10193 = vmatmul.mubr.msk.f32.vlgmr.msra.gmra.mrb[2].mxu1 %vm286_vm2, %v9886_v28 }
 0x148   : > { %7119 = vrot.lane.b32.xlu1 %v11096_v63, %s10552_s24  ;;  %7113 = vrot.lane.b32.xlu0 %v11073_v52, %s10552_s24 }
 0x149   : > { %9899 = vmatprep.subr.msk.mxu0 %vm290_vm1, %v4716_v40  ;;  %4874 = vmatprep.mubr.f32.mxu1 %v10531_v0 }
 0x14a   : > { %v4705_v41 = vpop.permute.xlu1 %4704  ;;  %v4699_v42 = vpop.permute.xlu0 %4698  ;;  %4803 = vmatprep.mubr.f32.mxu0 %v10531_v0 }
 0x14b   : > { %v4715_v43 = vsel %vm4714_vm15, %v4699_v42, %v4701_v39  ;;  %v4717_v48 = vsel %vm4714_vm15, %v4703_v38, %v4705_v41 }
 0x14c   : > { %7123 = vrot.lane.b32.xlu1 %v11120_v14, %s10552_s24  ;;  %7121 = vrot.lane.b32.xlu0 %v11106_v10, %s10552_s24 }
 0x14d   : > { %9900 = vmatpush1.msk.msra.mxu0 %vm290_vm1, %v4715_v43 }
 0x14e   : > { %v4709_v45 = vpop.permute.xlu1 %4708  ;;  %v4707_v46 = vpop.permute.xlu0 %4706  ;;  %9901 = vmatmul.mubr.msk.f32.vlgmr.msra.gmra.mrb[0].mxu0 %vm286_vm2, %v9898_v44 }
 0x14f   : > { %v4718_v47 = vsel %vm4714_vm15, %v4705_v41, %v4707_v46  ;;  %4945 = vmatprep.mubr.f32.mxu0 %v10531_v0  ;;  %v4719_v54 = vsel %vm4714_vm15, %v4707_v46, %v4709_v45 }
 0x150   : > { %7127 = vrot.lane.b32.xlu1 %v11138_v3, %s10552_s24  ;;  %7125 = vrot.lane.b32.xlu0 %v11124_v15, %s10552_s24 }
 0x151   : > { %9902 = vmatprep.subr.msk.mxu1 %vm290_vm1, %v4718_v47 }
 0x152   : > { %9903 = vmatpush1.msk.msra.mxu1 %vm290_vm1, %v4717_v48  ;;  %v4713_v49 = vpop.permute.xlu1 %4712  ;;  %v4711_v50 = vpop.permute.xlu0 %4710 }
 0x153   : > { %v4721_v51 = vsel %vm4714_vm15, %v4711_v50, %v4713_v49  ;;  %10195 = vmatprep.subr.mxu1 %v10531_v0  ;;  %9904 = vmatmul.mubr.msk.f32.vlgmr.msra.gmra.mrb[0].mxu1 %vm286_vm2, %v9898_v44  ;;  %v4720_v53 = vsel %vm4714_vm15, %v4709_v45, %v4711_v50  ;;  %vm9199_vm15 = vcmask 277504  }
 0x154   : > { %7462 = vrot.lane.b32.xlu1 %v11087_v58, %s10553_s27  ;;  %7460 = vrot.lane.b32.xlu0 %v11082_v56, %s10553_s27 }
 0x155   : > { %9905 = vmatprep.subr.msk.mxu0 %vm290_vm1, %v4720_v53  ;;  %10196 = vmatpush3.msk.msra.mxu1 %vm290_vm1, %v4721_v51 }
 0x156   : > { %9906 = vmatpush1.msk.msra.mxu0 %vm290_vm1, %v4719_v54  ;;  %v5048_v55 = vpop.permute.xlu1 %5047  ;;  %v5046_v57 = vpop.permute.xlu0 %5045  ;;  %10197 = vmatprep.mubr.msk.f32.mxu1 %vm10540_vm3, %v10531_v0  ;;  %v9946_v54 = vld [vmem:[%s11720_s1 + $0x88] sm:$0xff] }
 0x157   : > { %v5061_v59 = vsel %vm5059_vm0, %v5046_v57, %v5048_v55  ;;  %9907 = vmatmul.mubr.msk.f32.vlgmr.msra.gmra.mrb[2].mxu0 %vm286_vm2, %v9898_v44  ;;  %10198 = vmatmul.mubr.msk.f32.vlgmr.msra.gmra.mrb[2].mxu1 %vm286_vm2, %v9898_v44 }
 0x158   : > { %7464 = vrot.lane.b32.xlu1 %v11096_v63, %s10553_s27  ;;  %7458 = vrot.lane.b32.xlu0 %v11073_v52, %s10553_s27 }
 0x159   : > { %9911 = vmatprep.subr.msk.mxu0 %vm290_vm1, %v5061_v59  ;;  %5219 = vmatprep.mubr.f32.mxu1 %v10531_v0 }
 0x15a   : > { %v5050_v60 = vpop.permute.xlu1 %5049  ;;  %v5044_v61 = vpop.permute.xlu0 %5043  ;;  %5148 = vmatprep.mubr.f32.mxu0 %v10531_v0 }
 0x15b   : > { %v5060_v62 = vsel %vm5059_vm0, %v5044_v61, %v5046_v57  ;;  %v5062_v1 = vsel %vm5059_vm0, %v5048_v55, %v5050_v60 }
 0x15c   : > { %7468 = vrot.lane.b32.xlu1 %v11120_v14, %s10553_s27  ;;  %7466 = vrot.lane.b32.xlu0 %v11106_v10, %s10553_s27 }
 0x15d   : > { %9912 = vmatpush1.msk.msra.mxu0 %vm290_vm1, %v5060_v62 }
 0x15e   : > { %v5054_v11 = vpop.permute.xlu1 %5053  ;;  %v5052_v12 = vpop.permute.xlu0 %5051  ;;  %9913 = vmatmul.mubr.msk.f32.vlgmr.msra.gmra.mrb[0].mxu0 %vm286_vm2, %v9910_v9 }
 0x15f   : > { %v5063_v13 = vsel %vm5059_vm0, %v5050_v60, %v5052_v12  ;;  %5290 = vmatprep.mubr.f32.mxu0 %v10531_v0  ;;  %v5064_v2 = vsel %vm5059_vm0, %v5052_v12, %v5054_v11 }
 0x160   : > { %7472 = vrot.lane.b32.xlu1 %v11138_v3, %s10553_s27  ;;  %7470 = vrot.lane.b32.xlu0 %v11124_v15, %s10553_s27 }
 0x161   : > { %9914 = vmatprep.subr.msk.mxu1 %vm290_vm1, %v5063_v13 }
 0x162   : > { %9915 = vmatpush1.msk.msra.mxu1 %vm290_vm1, %v5062_v1  ;;  %v5058_v6 = vpop.permute.xlu1 %5057  ;;  %v5056_v16 = vpop.permute.xlu0 %5055 }
 0x163   : > { %v5066_v17 = vsel %vm5059_vm0, %v5056_v16, %v5058_v6  ;;  %10200 = vmatprep.subr.mxu1 %v10531_v0  ;;  %9916 = vmatmul.mubr.msk.f32.vlgmr.msra.gmra.mrb[0].mxu1 %vm286_vm2, %v9910_v9  ;;  %v5065_v18 = vsel %vm5059_vm0, %v5054_v11, %v5056_v16 }
 0x164   : > { %7807 = vrot.lane.b32.xlu1 %v11087_v58, %s10554_s30  ;;  %7805 = vrot.lane.b32.xlu0 %v11082_v56, %s10554_s30 }
 0x165   : > { %9917 = vmatprep.subr.msk.mxu0 %vm290_vm1, %v5065_v18  ;;  %10201 = vmatpush3.msk.msra.mxu1 %vm290_vm1, %v5066_v17 }
 0x166   : > { %9918 = vmatpush1.msk.msra.mxu0 %vm290_vm1, %v5064_v2  ;;  %v5393_v19 = vpop.permute.xlu1 %5392  ;;  %v5391_v20 = vpop.permute.xlu0 %5390  ;;  %10202 = vmatprep.mubr.msk.f32.mxu1 %vm10540_vm3, %v10531_v0  ;;  %v9958_v2 = vld [vmem:[%s11720_s1 + $0x90] sm:$0xff] }
 0x167   : > { %v5406_v21 = vsel %vm5404_vm4, %v5391_v20, %v5393_v19  ;;  %9919 = vmatmul.mubr.msk.f32.vlgmr.msra.gmra.mrb[2].mxu0 %vm286_vm2, %v9910_v9  ;;  %10203 = vmatmul.mubr.msk.f32.vlgmr.msra.gmra.mrb[2].mxu1 %vm286_vm2, %v9910_v9 }
 0x168   : > { %7809 = vrot.lane.b32.xlu1 %v11096_v63, %s10554_s30  ;;  %7803 = vrot.lane.b32.xlu0 %v11073_v52, %s10554_s30 }
 0x169   : > { %9923 = vmatprep.subr.msk.mxu0 %vm290_vm1, %v5406_v21  ;;  %5564 = vmatprep.mubr.f32.mxu1 %v10531_v0 }
 0x16a   : > { %v5395_v4 = vpop.permute.xlu1 %5394  ;;  %v5389_v5 = vpop.permute.xlu0 %5388  ;;  %5493 = vmatprep.mubr.f32.mxu0 %v10531_v0 }
 0x16b   : > { %v5405_v22 = vsel %vm5404_vm4, %v5389_v5, %v5391_v20  ;;  %v5407_v25 = vsel %vm5404_vm4, %v5393_v19, %v5395_v4 }
 0x16c   : > { %7813 = vrot.lane.b32.xlu1 %v11120_v14, %s10554_s30  ;;  %7811 = vrot.lane.b32.xlu0 %v11106_v10, %s10554_s30 }
 0x16d   : > { %9924 = vmatpush1.msk.msra.mxu0 %vm290_vm1, %v5405_v22 }
 0x16e   : > { %v5399_v24 = vpop.permute.xlu1 %5398  ;;  %v5397_v7 = vpop.permute.xlu0 %5396  ;;  %9925 = vmatmul.mubr.msk.f32.vlgmr.msra.gmra.mrb[0].mxu0 %vm286_vm2, %v9922_v23 }
 0x16f   : > { %v5408_v8 = vsel %vm5404_vm4, %v5395_v4, %v5397_v7  ;;  %5635 = vmatprep.mubr.f32.mxu0 %v10531_v0  ;;  %v5409_v30 = vsel %vm5404_vm4, %v5397_v7, %v5399_v24 }
 0x170   : > { %7817 = vrot.lane.b32.xlu1 %v11138_v3, %s10554_s30  ;;  %7815 = vrot.lane.b32.xlu0 %v11124_v15, %s10554_s30 }
 0x171   : > { %9926 = vmatprep.subr.msk.mxu1 %vm290_vm1, %v5408_v8 }
 0x172   : > { %9927 = vmatpush1.msk.msra.mxu1 %vm290_vm1, %v5407_v25  ;;  %v5403_v26 = vpop.permute.xlu1 %5402  ;;  %v5401_v27 = vpop.permute.xlu0 %5400 }
 0x173   : > { %v5410_v28 = vsel %vm5404_vm4, %v5399_v24, %v5401_v27  ;;  %v5411_v29 = vsel %vm5404_vm4, %v5401_v27, %v5403_v26  ;;  %10205 = vmatprep.subr.mxu1 %v10531_v0  ;;  %9928 = vmatmul.mubr.msk.f32.vlgmr.msra.gmra.mrb[0].mxu1 %vm286_vm2, %v9922_v23 }
 0x174   : > { %8152 = vrot.lane.b32.xlu1 %v11087_v58, %s10555_s8  ;;  %8150 = vrot.lane.b32.xlu0 %v11082_v56, %s10555_s8 }
 0x175   : > { %9929 = vmatprep.subr.msk.mxu0 %vm290_vm1, %v5410_v28  ;;  %10206 = vmatpush3.msk.msra.mxu1 %vm290_vm1, %v5411_v29  ;;  %v9970_v28 = vld [vmem:[%s11720_s1 + $0x98] sm:$0xff] }
 0x176   : > { %9930 = vmatpush1.msk.msra.mxu0 %vm290_vm1, %v5409_v30  ;;  %v5738_v31 = vpop.permute.xlu1 %5737  ;;  %v5736_v32 = vpop.permute.xlu0 %5735  ;;  %10207 = vmatprep.mubr.msk.f32.mxu1 %vm10540_vm3, %v10531_v0 }
 0x177   : > { %v5751_v33 = vsel %vm5749_vm5, %v5736_v32, %v5738_v31  ;;  %9931 = vmatmul.mubr.msk.f32.vlgmr.msra.gmra.mrb[2].mxu0 %vm286_vm2, %v9922_v23  ;;  %10208 = vmatmul.mubr.msk.f32.vlgmr.msra.gmra.mrb[2].mxu1 %vm286_vm2, %v9922_v23 }
 0x178   : > { %8154 = vrot.lane.b32.xlu1 %v11096_v63, %s10555_s8  ;;  %8148 = vrot.lane.b32.xlu0 %v11073_v52, %s10555_s8 }
 0x179   : > { %9935 = vmatprep.subr.msk.mxu0 %vm290_vm1, %v5751_v33  ;;  %5909 = vmatprep.mubr.f32.mxu1 %v10531_v0 }
 0x17a   : > { %v5740_v34 = vpop.permute.xlu1 %5739  ;;  %v5734_v35 = vpop.permute.xlu0 %5733  ;;  %5838 = vmatprep.mubr.f32.mxu0 %v10531_v0 }
 0x17b   : > { %v5750_v36 = vsel %vm5749_vm5, %v5734_v35, %v5736_v32  ;;  %v5752_v41 = vsel %vm5749_vm5, %v5738_v31, %v5740_v34 }
 0x17c   : > { %8158 = vrot.lane.b32.xlu1 %v11120_v14, %s10555_s8  ;;  %8156 = vrot.lane.b32.xlu0 %v11106_v10, %s10555_s8 }
 0x17d   : > { %9936 = vmatpush1.msk.msra.mxu0 %vm290_vm1, %v5750_v36 }
 0x17e   : > { %v5744_v38 = vpop.permute.xlu1 %5743  ;;  %v5742_v39 = vpop.permute.xlu0 %5741  ;;  %9937 = vmatmul.mubr.msk.f32.vlgmr.msra.gmra.mrb[0].mxu0 %vm286_vm2, %v9934_v37 }
 0x17f   : > { %v5753_v40 = vsel %vm5749_vm5, %v5740_v34, %v5742_v39  ;;  %5980 = vmatprep.mubr.f32.mxu0 %v10531_v0  ;;  %v5754_v46 = vsel %vm5749_vm5, %v5742_v39, %v5744_v38 }
 0x180   : > { %8162 = vrot.lane.b32.xlu1 %v11138_v3, %s10555_s8  ;;  %8160 = vrot.lane.b32.xlu0 %v11124_v15, %s10555_s8 }
 0x181   : > { %9938 = vmatprep.subr.msk.mxu1 %vm290_vm1, %v5753_v40 }
 0x182   : > { %9939 = vmatpush1.msk.msra.mxu1 %vm290_vm1, %v5752_v41  ;;  %v5748_v42 = vpop.permute.xlu1 %5747  ;;  %v5746_v43 = vpop.permute.xlu0 %5745 }
 0x183   : > { %v5755_v44 = vsel %vm5749_vm5, %v5744_v38, %v5746_v43  ;;  %v5756_v45 = vsel %vm5749_vm5, %v5746_v43, %v5748_v42  ;;  %10210 = vmatprep.subr.mxu1 %v10531_v0  ;;  %9940 = vmatmul.mubr.msk.f32.vlgmr.msra.gmra.mrb[0].mxu1 %vm286_vm2, %v9934_v37 }
 0x184   : > { %8497 = vrot.lane.b32.xlu1 %v11087_v58, %s10556_s11  ;;  %8495 = vrot.lane.b32.xlu0 %v11082_v56, %s10556_s11 }
 0x185   : > { %9941 = vmatprep.subr.msk.mxu0 %vm290_vm1, %v5755_v44  ;;  %10211 = vmatpush3.msk.msra.mxu1 %vm290_vm1, %v5756_v45 }
 0x186   : > { %9942 = vmatpush1.msk.msra.mxu0 %vm290_vm1, %v5754_v46  ;;  %v6083_v47 = vpop.permute.xlu1 %6082  ;;  %v6081_v48 = vpop.permute.xlu0 %6080  ;;  %10212 = vmatprep.mubr.msk.f32.mxu1 %vm10540_vm3, %v10531_v0 }
 0x187   : > { %v6096_v49 = vsel %vm6094_vm6, %v6081_v48, %v6083_v47  ;;  %9943 = vmatmul.mubr.msk.f32.vlgmr.msra.gmra.mrb[2].mxu0 %vm286_vm2, %v9934_v37  ;;  %10213 = vmatmul.mubr.msk.f32.vlgmr.msra.gmra.mrb[2].mxu1 %vm286_vm2, %v9934_v37  ;;  %v9982_v37 = vld [vmem:[%s11720_s1 + $0xa0] sm:$0xff] }
 0x188   : > { %8499 = vrot.lane.b32.xlu1 %v11096_v63, %s10556_s11  ;;  %8493 = vrot.lane.b32.xlu0 %v11073_v52, %s10556_s11 }
 0x189   : > { %9947 = vmatprep.subr.msk.mxu0 %vm290_vm1, %v6096_v49  ;;  %6254 = vmatprep.mubr.f32.mxu1 %v10531_v0 }
 0x18a   : > { %v6085_v50 = vpop.permute.xlu1 %6084  ;;  %v6079_v51 = vpop.permute.xlu0 %6078  ;;  %6183 = vmatprep.mubr.f32.mxu0 %v10531_v0 }
 0x18b   : > { %v6095_v53 = vsel %vm6094_vm6, %v6079_v51, %v6081_v48  ;;  %v6097_v60 = vsel %vm6094_vm6, %v6083_v47, %v6085_v50 }
 0x18c   : > { %8503 = vrot.lane.b32.xlu1 %v11120_v14, %s10556_s11  ;;  %8501 = vrot.lane.b32.xlu0 %v11106_v10, %s10556_s11 }
 0x18d   : > { %9948 = vmatpush1.msk.msra.mxu0 %vm290_vm1, %v6095_v53 }
 0x18e   : > { %v6089_v55 = vpop.permute.xlu1 %6088  ;;  %v6087_v57 = vpop.permute.xlu0 %6086  ;;  %9949 = vmatmul.mubr.msk.f32.vlgmr.msra.gmra.mrb[0].mxu0 %vm286_vm2, %v9946_v54 }
 0x18f   : > { %v6098_v59 = vsel %vm6094_vm6, %v6085_v50, %v6087_v57  ;;  %6325 = vmatprep.mubr.f32.mxu0 %v10531_v0  ;;  %v6099_v12 = vsel %vm6094_vm6, %v6087_v57, %v6089_v55 }
 0x190   : > { %8507 = vrot.lane.b32.xlu1 %v11138_v3, %s10556_s11  ;;  %8505 = vrot.lane.b32.xlu0 %v11124_v15, %s10556_s11 }
 0x191   : > { %9950 = vmatprep.subr.msk.mxu1 %vm290_vm1, %v6098_v59 }
 0x192   : > { %9951 = vmatpush1.msk.msra.mxu1 %vm290_vm1, %v6097_v60  ;;  %v6093_v61 = vpop.permute.xlu1 %6092  ;;  %v6091_v62 = vpop.permute.xlu0 %6090 }
 0x193   : > { %v6100_v9 = vsel %vm6094_vm6, %v6089_v55, %v6091_v62  ;;  %v6101_v11 = vsel %vm6094_vm6, %v6091_v62, %v6093_v61  ;;  %10215 = vmatprep.subr.mxu1 %v10531_v0  ;;  %9952 = vmatmul.mubr.msk.f32.vlgmr.msra.gmra.mrb[0].mxu1 %vm286_vm2, %v9946_v54 }
 0x194   : > { %8842 = vrot.lane.b32.xlu1 %v11087_v58, %s10557_s14  ;;  %8840 = vrot.lane.b32.xlu0 %v11082_v56, %s10557_s14 }
 0x195   : > { %9953 = vmatprep.subr.msk.mxu0 %vm290_vm1, %v6100_v9  ;;  %10216 = vmatpush3.msk.msra.mxu1 %vm290_vm1, %v6101_v11 }
 0x196   : > { %9954 = vmatpush1.msk.msra.mxu0 %vm290_vm1, %v6099_v12  ;;  %v6428_v13 = vpop.permute.xlu1 %6427  ;;  %v6426_v1 = vpop.permute.xlu0 %6425  ;;  %10217 = vmatprep.mubr.msk.f32.mxu1 %vm10540_vm3, %v10531_v0 }
 0x197   : > { %v6441_v6 = vsel %vm6439_vm7, %v6426_v1, %v6428_v13  ;;  %9955 = vmatmul.mubr.msk.f32.vlgmr.msra.gmra.mrb[2].mxu0 %vm286_vm2, %v9946_v54  ;;  %10218 = vmatmul.mubr.msk.f32.vlgmr.msra.gmra.mrb[2].mxu1 %vm286_vm2, %v9946_v54  ;;  %v9994_v54 = vld [vmem:[%s11720_s1 + $0xa8] sm:$0xff] }
 0x198   : > { %8844 = vrot.lane.b32.xlu1 %v11096_v63, %s10557_s14  ;;  %8838 = vrot.lane.b32.xlu0 %v11073_v52, %s10557_s14 }
 0x199   : > { %9959 = vmatprep.subr.msk.mxu0 %vm290_vm1, %v6441_v6  ;;  %6599 = vmatprep.mubr.f32.mxu1 %v10531_v0 }
 0x19a   : > { %v6430_v16 = vpop.permute.xlu1 %6429  ;;  %v6424_v17 = vpop.permute.xlu0 %6423  ;;  %6528 = vmatprep.mubr.f32.mxu0 %v10531_v0 }
 0x19b   : > { %v6440_v18 = vsel %vm6439_vm7, %v6424_v17, %v6426_v1  ;;  %v6442_v4 = vsel %vm6439_vm7, %v6428_v13, %v6430_v16 }
 0x19c   : > { %8848 = vrot.lane.b32.xlu1 %v11120_v14, %s10557_s14  ;;  %8846 = vrot.lane.b32.xlu0 %v11106_v10, %s10557_s14 }
 0x19d   : > { %9960 = vmatpush1.msk.msra.mxu0 %vm290_vm1, %v6440_v18 }
 0x19e   : > { %v6434_v19 = vpop.permute.xlu1 %6433  ;;  %v6432_v20 = vpop.permute.xlu0 %6431  ;;  %9961 = vmatmul.mubr.msk.f32.vlgmr.msra.gmra.mrb[0].mxu0 %vm286_vm2, %v9958_v2 }
 0x19f   : > { %v6443_v21 = vsel %vm6439_vm7, %v6430_v16, %v6432_v20  ;;  %6670 = vmatprep.mubr.f32.mxu0 %v10531_v0  ;;  %v6444_v7 = vsel %vm6439_vm7, %v6432_v20, %v6434_v19 }
 0x1a0   : > { %8852 = vrot.lane.b32.xlu1 %v11138_v3, %s10557_s14  ;;  %8850 = vrot.lane.b32.xlu0 %v11124_v15, %s10557_s14 }
 0x1a1   : > { %9962 = vmatprep.subr.msk.mxu1 %vm290_vm1, %v6443_v21 }
 0x1a2   : > { %9963 = vmatpush1.msk.msra.mxu1 %vm290_vm1, %v6442_v4  ;;  %v6438_v5 = vpop.permute.xlu1 %6437  ;;  %v6436_v22 = vpop.permute.xlu0 %6435 }
 0x1a3   : > { %v6445_v23 = vsel %vm6439_vm7, %v6434_v19, %v6436_v22  ;;  %v6446_v24 = vsel %vm6439_vm7, %v6436_v22, %v6438_v5  ;;  %10220 = vmatprep.subr.mxu1 %v10531_v0  ;;  %9964 = vmatmul.mubr.msk.f32.vlgmr.msra.gmra.mrb[0].mxu1 %vm286_vm2, %v9958_v2 }
 0x1a4   : > { %9187 = vrot.lane.b32.xlu1 %v11087_v58, %s10558_s17  ;;  %9185 = vrot.lane.b32.xlu0 %v11082_v56, %s10558_s17 }
 0x1a5   : > { %9965 = vmatprep.subr.msk.mxu0 %vm290_vm1, %v6445_v23  ;;  %10221 = vmatpush3.msk.msra.mxu1 %vm290_vm1, %v6446_v24 }
 0x1a6   : > { %9966 = vmatpush1.msk.msra.mxu0 %vm290_vm1, %v6444_v7  ;;  %v6773_v8 = vpop.permute.xlu1 %6772  ;;  %v6771_v25 = vpop.permute.xlu0 %6770  ;;  %10222 = vmatprep.mubr.msk.f32.mxu1 %vm10540_vm3, %v10531_v0 }
 0x1a7   : > { %v6786_v26 = vsel %vm6784_vm8, %v6771_v25, %v6773_v8  ;;  %9967 = vmatmul.mubr.msk.f32.vlgmr.msra.gmra.mrb[2].mxu0 %vm286_vm2, %v9958_v2  ;;  %10223 = vmatmul.mubr.msk.f32.vlgmr.msra.gmra.mrb[2].mxu1 %vm286_vm2, %v9958_v2  ;;  %v10006_v2 = vld [vmem:[%s11720_s1 + $0xb0] sm:$0xff] }
 0x1a8   : > { %9189 = vrot.lane.b32.xlu1 %v11096_v63, %s10558_s17  ;;  %9183 = vrot.lane.b32.xlu0 %v11073_v52, %s10558_s17 }
 0x1a9   : > { %9971 = vmatprep.subr.msk.mxu0 %vm290_vm1, %v6786_v26  ;;  %6944 = vmatprep.mubr.f32.mxu1 %v10531_v0 }
 0x1aa   : > { %v6775_v56 = vpop.permute.xlu1 %6774  ;;  %v6769_v58 = vpop.permute.xlu0 %6768  ;;  %6873 = vmatprep.mubr.f32.mxu0 %v10531_v0 }
 0x1ab   : > { %v6785_v27 = vsel %vm6784_vm8, %v6769_v58, %v6771_v25 }
 0x1ac   : > { %9193 = vrot.lane.b32.xlu1 %v11120_v14, %s10558_s17  ;;  %9191 = vrot.lane.b32.xlu0 %v11106_v10, %s10558_s17  ;;  %v6787_v14 = vsel %vm6784_vm8, %v6773_v8, %v6775_v56 }
 0x1ad   : > { %9972 = vmatpush1.msk.msra.mxu0 %vm290_vm1, %v6785_v27 }
 0x1ae   : > { %v6779_v52 = vpop.permute.xlu1 %6778  ;;  %v6777_v63 = vpop.permute.xlu0 %6776  ;;  %9973 = vmatmul.mubr.msk.f32.vlgmr.msra.gmra.mrb[0].mxu0 %vm286_vm2, %v9970_v28 }
 0x1af   : > { %v6788_v29 = vsel %vm6784_vm8, %v6775_v56, %v6777_v63  ;;  %7015 = vmatprep.mubr.f32.mxu0 %v10531_v0 }
 0x1b0   : > { %9197 = vrot.lane.b32.xlu1 %v11138_v3, %s10558_s17  ;;  %9195 = vrot.lane.b32.xlu0 %v11124_v15, %s10558_s17  ;;  %v6789_v3 = vsel %vm6784_vm8, %v6777_v63, %v6779_v52  ;;  %s9741_s17 = sshll.u32 %s11726_s19, 3 }
 0x1b1   : > { %9974 = vmatprep.subr.msk.mxu1 %vm290_vm1, %v6788_v29  ;;  %s241_s21 = scalar_lea.vmem %s11723_s4, %s9741_s17  ;;  %s245_s25 = scalar_lea.vmem %s11724_s5, %s9741_s17 }
 0x1b2   : > { %9975 = vmatpush1.msk.msra.mxu1 %vm290_vm1, %v6787_v14  ;;  %v6783_v10 = vpop.permute.xlu1 %6782  ;;  %v6781_v30 = vpop.permute.xlu0 %6780 }
 0x1b3   : > { %v6790_v31 = vsel %vm6784_vm8, %v6779_v52, %v6781_v30  ;;  %v6791_v32 = vsel %vm6784_vm8, %v6781_v30, %v6783_v10  ;;  %10225 = vmatprep.subr.mxu1 %v10531_v0  ;;  %9976 = vmatmul.mubr.msk.f32.vlgmr.msra.gmra.mrb[0].mxu1 %vm286_vm2, %v9970_v28 }
 0x1b4   : > { %9977 = vmatprep.subr.msk.mxu0 %vm290_vm1, %v6790_v31  ;;  %10226 = vmatpush3.msk.msra.mxu1 %vm290_vm1, %v6791_v32 }
 0x1b5   : > { %9978 = vmatpush1.msk.msra.mxu0 %vm290_vm1, %v6789_v3  ;;  %10227 = vmatprep.mubr.msk.f32.mxu1 %vm10540_vm3, %v10531_v0 }
 0x1b6   : > { %v7118_v15 = vpop.permute.xlu1 %7117  ;;  %v7116_v33 = vpop.permute.xlu0 %7115  ;;  %9979 = vmatmul.mubr.msk.f32.vlgmr.msra.gmra.mrb[2].mxu0 %vm286_vm2, %v9970_v28 }
 0x1b7   : > { %v7131_v34 = vsel %vm7129_vm9, %v7116_v33, %v7118_v15  ;;  %10228 = vmatmul.mubr.msk.f32.vlgmr.msra.gmra.mrb[2].mxu1 %vm286_vm2, %v9970_v28  ;;  %7218 = vmatprep.mubr.f32.mxu0 %v10531_v0  ;;  %v10018_v28 = vld [vmem:[%s11720_s1 + $0xb8] sm:$0xff] }
 0x1b8   : > { %9983 = vmatprep.subr.msk.mxu0 %vm290_vm1, %v7131_v34  ;;  %7289 = vmatprep.mubr.f32.mxu1 %v10531_v0 }
 0x1ba   : > { %v7120_v35 = vpop.permute.xlu1 %7119  ;;  %v7114_v36 = vpop.permute.xlu0 %7113 }
 0x1bb   : > { %v7130_v38 = vsel %vm7129_vm9, %v7114_v36, %v7116_v33  ;;  %v7132_v42 = vsel %vm7129_vm9, %v7118_v15, %v7120_v35 }
 0x1bc   : > { %9984 = vmatpush1.msk.msra.mxu0 %vm290_vm1, %v7130_v38  ;;  %v10030_v38 = vld [vmem:[%s11720_s1 + $0xc0] sm:$0xff] }
 0x1bd   : > { %9985 = vmatmul.mubr.msk.f32.vlgmr.msra.gmra.mrb[0].mxu0 %vm286_vm2, %v9982_v37 }
 0x1be   : > { %v7124_v39 = vpop.permute.xlu1 %7123  ;;  %v7122_v40 = vpop.permute.xlu0 %7121  ;;  %7360 = vmatprep.mubr.f32.mxu0 %v10531_v0 }
 0x1bf   : > { %v7133_v41 = vsel %vm7129_vm9, %v7120_v35, %v7122_v40  ;;  %v7134_v47 = vsel %vm7129_vm9, %v7122_v40, %v7124_v39 }
 0x1c0   : > { %9986 = vmatprep.subr.msk.mxu1 %vm290_vm1, %v7133_v41 }
 0x1c1   : > { %9987 = vmatpush1.msk.msra.mxu1 %vm290_vm1, %v7132_v42 }
 0x1c2   : > { %v7128_v43 = vpop.permute.xlu1 %7127  ;;  %v7126_v44 = vpop.permute.xlu0 %7125  ;;  %10230 = vmatprep.subr.mxu1 %v10531_v0  ;;  %9988 = vmatmul.mubr.msk.f32.vlgmr.msra.gmra.mrb[0].mxu1 %vm286_vm2, %v9982_v37 }
 0x1c3   : > { %v7135_v45 = vsel %vm7129_vm9, %v7124_v39, %v7126_v44  ;;  %v7136_v46 = vsel %vm7129_vm9, %v7126_v44, %v7128_v43  ;;  %10232 = vmatprep.mubr.msk.f32.mxu1 %vm10540_vm3, %v10531_v0 }
 0x1c4   : > { %9989 = vmatprep.subr.msk.mxu0 %vm290_vm1, %v7135_v45  ;;  %10231 = vmatpush3.msk.msra.mxu1 %vm290_vm1, %v7136_v46 }
 0x1c5   : > { %9990 = vmatpush1.msk.msra.mxu0 %vm290_vm1, %v7134_v47 }
 0x1c6   : > { %v7463_v48 = vpop.permute.xlu1 %7462  ;;  %v7461_v49 = vpop.permute.xlu0 %7460  ;;  %9991 = vmatmul.mubr.msk.f32.vlgmr.msra.gmra.mrb[2].mxu0 %vm286_vm2, %v9982_v37  ;;  %10233 = vmatmul.mubr.msk.f32.vlgmr.msra.gmra.mrb[2].mxu1 %vm286_vm2, %v9982_v37 }
 0x1c7   : > { %v7476_v50 = vsel %vm7474_vm10, %v7461_v49, %v7463_v48  ;;  %7634 = vmatprep.mubr.f32.mxu1 %v10531_v0  ;;  %7563 = vmatprep.mubr.f32.mxu0 %v10531_v0 }
 0x1c8   : > { %9995 = vmatprep.subr.msk.mxu0 %vm290_vm1, %v7476_v50 }
 0x1ca   : > { %v7465_v51 = vpop.permute.xlu1 %7464  ;;  %v7459_v53 = vpop.permute.xlu0 %7458 }
 0x1cb   : > { %v7475_v55 = vsel %vm7474_vm10, %v7459_v53, %v7461_v49  ;;  %v7477_v61 = vsel %vm7474_vm10, %v7463_v48, %v7465_v51 }
 0x1cc   : > { %9996 = vmatpush1.msk.msra.mxu0 %vm290_vm1, %v7475_v55  ;;  %v10042_v55 = vld [vmem:[%s11720_s1 + $0xc8] sm:$0xff] }
 0x1cd   : > { %9997 = vmatmul.mubr.msk.f32.vlgmr.msra.gmra.mrb[0].mxu0 %vm286_vm2, %v9994_v54 }
 0x1ce   : > { %v7469_v57 = vpop.permute.xlu1 %7468  ;;  %v7467_v59 = vpop.permute.xlu0 %7466  ;;  %7705 = vmatprep.mubr.f32.mxu0 %v10531_v0 }
 0x1cf   : > { %v7478_v60 = vsel %vm7474_vm10, %v7465_v51, %v7467_v59  ;;  %v7479_v13 = vsel %vm7474_vm10, %v7467_v59, %v7469_v57 }
 0x1d0   : > { %9998 = vmatprep.subr.msk.mxu1 %vm290_vm1, %v7478_v60 }
 0x1d1   : > { %9999 = vmatpush1.msk.msra.mxu1 %vm290_vm1, %v7477_v61 }
 0x1d2   : > { %v7473_v62 = vpop.permute.xlu1 %7472  ;;  %v7471_v9 = vpop.permute.xlu0 %7470  ;;  %10235 = vmatprep.subr.mxu1 %v10531_v0  ;;  %10000 = vmatmul.mubr.msk.f32.vlgmr.msra.gmra.mrb[0].mxu1 %vm286_vm2, %v9994_v54 }
 0x1d3   : > { %v7480_v11 = vsel %vm7474_vm10, %v7469_v57, %v7471_v9  ;;  %v7481_v12 = vsel %vm7474_vm10, %v7471_v9, %v7473_v62  ;;  %10237 = vmatprep.mubr.msk.f32.mxu1 %vm10540_vm3, %v10531_v0 }
 0x1d4   : > { %10001 = vmatprep.subr.msk.mxu0 %vm290_vm1, %v7480_v11  ;;  %10236 = vmatpush3.msk.msra.mxu1 %vm290_vm1, %v7481_v12 }
 0x1d5   : > { %10002 = vmatpush1.msk.msra.mxu0 %vm290_vm1, %v7479_v13 }
 0x1d6   : > { %v7808_v1 = vpop.permute.xlu1 %7807  ;;  %v7806_v6 = vpop.permute.xlu0 %7805  ;;  %10003 = vmatmul.mubr.msk.f32.vlgmr.msra.gmra.mrb[2].mxu0 %vm286_vm2, %v9994_v54  ;;  %10238 = vmatmul.mubr.msk.f32.vlgmr.msra.gmra.mrb[2].mxu1 %vm286_vm2, %v9994_v54 }
 0x1d7   : > { %v7821_v16 = vsel %vm7819_vm11, %v7806_v6, %v7808_v1  ;;  %7979 = vmatprep.mubr.f32.mxu1 %v10531_v0  ;;  %7908 = vmatprep.mubr.f32.mxu0 %v10531_v0 }
 0x1d8   : > { %10007 = vmatprep.subr.msk.mxu0 %vm290_vm1, %v7821_v16 }
 0x1da   : > { %v7810_v17 = vpop.permute.xlu1 %7809  ;;  %v7804_v18 = vpop.permute.xlu0 %7803 }
 0x1db   : > { %v7820_v19 = vsel %vm7819_vm11, %v7804_v18, %v7806_v6  ;;  %v7822_v5 = vsel %vm7819_vm11, %v7808_v1, %v7810_v17 }
 0x1dc   : > { %10008 = vmatpush1.msk.msra.mxu0 %vm290_vm1, %v7820_v19  ;;  %v10054_v19 = vld [vmem:[%s11720_s1 + $0xd0] sm:$0xff] }
 0x1dd   : > { %10009 = vmatmul.mubr.msk.f32.vlgmr.msra.gmra.mrb[0].mxu0 %vm286_vm2, %v10006_v2 }
 0x1de   : > { %v7814_v20 = vpop.permute.xlu1 %7813  ;;  %v7812_v21 = vpop.permute.xlu0 %7811  ;;  %8050 = vmatprep.mubr.f32.mxu0 %v10531_v0 }
 0x1df   : > { %v7823_v4 = vsel %vm7819_vm11, %v7810_v17, %v7812_v21  ;;  %v7824_v8 = vsel %vm7819_vm11, %v7812_v21, %v7814_v20 }
 0x1e0   : > { %10010 = vmatprep.subr.msk.mxu1 %vm290_vm1, %v7823_v4 }
 0x1e1   : > { %10011 = vmatpush1.msk.msra.mxu1 %vm290_vm1, %v7822_v5 }
 0x1e2   : > { %v7818_v22 = vpop.permute.xlu1 %7817  ;;  %v7816_v23 = vpop.permute.xlu0 %7815  ;;  %10240 = vmatprep.subr.mxu1 %v10531_v0  ;;  %10012 = vmatmul.mubr.msk.f32.vlgmr.msra.gmra.mrb[0].mxu1 %vm286_vm2, %v10006_v2 }
 0x1e3   : > { %v7825_v24 = vsel %vm7819_vm11, %v7814_v20, %v7816_v23  ;;  %v7826_v7 = vsel %vm7819_vm11, %v7816_v23, %v7818_v22  ;;  %10242 = vmatprep.mubr.msk.f32.mxu1 %vm10540_vm3, %v10531_v0 }
 0x1e4   : > { %10013 = vmatprep.subr.msk.mxu0 %vm290_vm1, %v7825_v24  ;;  %10241 = vmatpush3.msk.msra.mxu1 %vm290_vm1, %v7826_v7 }
 0x1e5   : > { %10014 = vmatpush1.msk.msra.mxu0 %vm290_vm1, %v7824_v8 }
 0x1e6   : > { %v8153_v25 = vpop.permute.xlu1 %8152  ;;  %v8151_v26 = vpop.permute.xlu0 %8150  ;;  %10015 = vmatmul.mubr.msk.f32.vlgmr.msra.gmra.mrb[2].mxu0 %vm286_vm2, %v10006_v2  ;;  %10243 = vmatmul.mubr.msk.f32.vlgmr.msra.gmra.mrb[2].mxu1 %vm286_vm2, %v10006_v2 }
 0x1e7   : > { %v8166_v56 = vsel %vm8164_vm12, %v8151_v26, %v8153_v25  ;;  %8324 = vmatprep.mubr.f32.mxu1 %v10531_v0  ;;  %8253 = vmatprep.mubr.f32.mxu0 %v10531_v0 }
 0x1e8   : > { %10019 = vmatprep.subr.msk.mxu0 %vm290_vm1, %v8166_v56 }
 0x1ea   : > { %v8155_v58 = vpop.permute.xlu1 %8154  ;;  %v8149_v27 = vpop.permute.xlu0 %8148 }
 0x1eb   : > { %v8165_v52 = vsel %vm8164_vm12, %v8149_v27, %v8151_v26  ;;  %v8167_v10 = vsel %vm8164_vm12, %v8153_v25, %v8155_v58  ;;  %v9516_v26 = vlaneseq  ;;  %v9514_v27 = vld [vmem:[%s11721_s2] sm:$0xff] }
 0x1ec   : > { %10020 = vmatpush1.msk.msra.mxu0 %vm290_vm1, %v8165_v52 }
 0x1ed   : > { %10021 = vmatmul.mubr.msk.f32.vlgmr.msra.gmra.mrb[0].mxu0 %vm286_vm2, %v10018_v28  ;;  %v9517_v56 = vshrl.u32 %v9516_v26, 7 }
 0x1ee   : > { %v8159_v63 = vpop.permute.xlu1 %8158  ;;  %v8157_v29 = vpop.permute.xlu0 %8156  ;;  %8395 = vmatprep.mubr.f32.mxu0 %v10531_v0 }
 0x1ef   : > { %v8168_v14 = vsel %vm8164_vm12, %v8155_v58, %v8157_v29  ;;  %v8169_v15 = vsel %vm8164_vm12, %v8157_v29, %v8159_v63  ;;  %v9518_v58 = vsub.s32 0, %v9517_v56  ;;  %v9530_v29 = vsub.s32 3, %v9517_v56 }
 0x1f0   : > { %10022 = vmatprep.subr.msk.mxu1 %vm290_vm1, %v8168_v14 }
 0x1f1   : > { %10023 = vmatpush1.msk.msra.mxu1 %vm290_vm1, %v8167_v10 }
 0x1f2   : > { %v8163_v30 = vpop.permute.xlu1 %8162  ;;  %v8161_v31 = vpop.permute.xlu0 %8160  ;;  %10245 = vmatprep.subr.mxu1 %v10531_v0  ;;  %10024 = vmatmul.mubr.msk.f32.vlgmr.msra.gmra.mrb[0].mxu1 %vm286_vm2, %v10018_v28 }
 0x1f3   : > { %v8170_v32 = vsel %vm8164_vm12, %v8159_v63, %v8161_v31  ;;  %v8171_v3 = vsel %vm8164_vm12, %v8161_v31, %v8163_v30  ;;  %10247 = vmatprep.mubr.msk.f32.mxu1 %vm10540_vm3, %v10531_v0  ;;  %v9526_v63 = vsub.s32 2, %v9517_v56 }
 0x1f4   : > { %10025 = vmatprep.subr.msk.mxu0 %vm290_vm1, %v8170_v32  ;;  %10246 = vmatpush3.msk.msra.mxu1 %vm290_vm1, %v8171_v3  ;;  %v9534_v3 = vsub.s32 4, %v9517_v56 }
 0x1f5   : > { %10026 = vmatpush1.msk.msra.mxu0 %vm290_vm1, %v8169_v15  ;;  %v9527_v32 = vrot.slane %v9514_v27, %v9526_v63  ;;  %v9542_v15 = vsub.s32 6, %v9517_v56 }
 0x1f6   : > { %v8498_v33 = vpop.permute.xlu1 %8497  ;;  %v8496_v34 = vpop.permute.xlu0 %8495  ;;  %10027 = vmatmul.mubr.msk.f32.vlgmr.msra.gmra.mrb[2].mxu0 %vm286_vm2, %v10018_v28  ;;  %10248 = vmatmul.mubr.msk.f32.vlgmr.msra.gmra.mrb[2].mxu1 %vm286_vm2, %v10018_v28  ;;  %v9519_v28 = vrot.slane %v9514_v27, %v9518_v58 }
 0x1f7   : > { %v8511_v35 = vsel %vm8509_vm13, %v8496_v34, %v8498_v33  ;;  %8669 = vmatprep.mubr.f32.mxu1 %v10531_v0  ;;  %8598 = vmatprep.mubr.f32.mxu0 %v10531_v0 }
 0x1f8   : > { %10031 = vmatprep.subr.msk.mxu0 %vm290_vm1, %v8511_v35  ;;  %v9538_v35 = vsub.s32 5, %v9517_v56 }
 0x1fa   : > { %v8500_v36 = vpop.permute.xlu1 %8499  ;;  %v8494_v37 = vpop.permute.xlu0 %8493 }
 0x1fb   : > { %v8510_v39 = vsel %vm8509_vm13, %v8494_v37, %v8496_v34  ;;  %v8512_v43 = vsel %vm8509_vm13, %v8498_v33, %v8500_v36  ;;  %v9531_v34 = vrot.slane %v9514_v27, %v9530_v29 }
 0x1fc   : > { %10032 = vmatpush1.msk.msra.mxu0 %vm290_vm1, %v8510_v39 }
 0x1fd   : > { %10033 = vmatmul.mubr.msk.f32.vlgmr.msra.gmra.mrb[0].mxu0 %vm286_vm2, %v10030_v38 }
 0x1fe   : > { %v8504_v40 = vpop.permute.xlu1 %8503  ;;  %v8502_v41 = vpop.permute.xlu0 %8501  ;;  %8740 = vmatprep.mubr.f32.mxu0 %v10531_v0 }
 0x1ff   : > { %v8513_v42 = vsel %vm8509_vm13, %v8500_v36, %v8502_v41  ;;  %v8514_v48 = vsel %vm8509_vm13, %v8502_v41, %v8504_v40 }
 0x200   : > { %10034 = vmatprep.subr.msk.mxu1 %vm290_vm1, %v8513_v42 }
 0x201   : > { %10035 = vmatpush1.msk.msra.mxu1 %vm290_vm1, %v8512_v43  ;;  %v9535_v43 = vrot.slane %v9514_v27, %v9534_v3 }
 0x202   : > { %v8508_v44 = vpop.permute.xlu1 %8507  ;;  %v8506_v45 = vpop.permute.xlu0 %8505  ;;  %10250 = vmatprep.subr.mxu1 %v10531_v0  ;;  %10036 = vmatmul.mubr.msk.f32.vlgmr.msra.gmra.mrb[0].mxu1 %vm286_vm2, %v10030_v38 }
 0x203   : > { %v8515_v46 = vsel %vm8509_vm13, %v8504_v40, %v8506_v45  ;;  %v8516_v47 = vsel %vm8509_vm13, %v8506_v45, %v8508_v44  ;;  %10252 = vmatprep.mubr.msk.f32.mxu1 %vm10540_vm3, %v10531_v0  ;;  %v9543_v44 = vrot.slane %v9514_v27, %v9542_v15 }
 0x204   : > { %10037 = vmatprep.subr.msk.mxu0 %vm290_vm1, %v8515_v46  ;;  %10251 = vmatpush3.msk.msra.mxu1 %vm290_vm1, %v8516_v47  ;;  %v9539_v46 = vrot.slane %v9514_v27, %v9538_v35 }
 0x205   : > { %10038 = vmatpush1.msk.msra.mxu0 %vm290_vm1, %v8514_v48 }
 0x206   : > { %v8843_v49 = vpop.permute.xlu1 %8842  ;;  %v8841_v50 = vpop.permute.xlu0 %8840  ;;  %10039 = vmatmul.mubr.msk.f32.vlgmr.msra.gmra.mrb[2].mxu0 %vm286_vm2, %v10030_v38  ;;  %10253 = vmatmul.mubr.msk.f32.vlgmr.msra.gmra.mrb[2].mxu1 %vm286_vm2, %v10030_v38 }
 0x207   : > { %v8856_v51 = vsel %vm8854_vm14, %v8841_v50, %v8843_v49  ;;  %9014 = vmatprep.mubr.f32.mxu1 %v10531_v0  ;;  %8943 = vmatprep.mubr.f32.mxu0 %v10531_v0 }
 0x208   : > { %10043 = vmatprep.subr.msk.mxu0 %vm290_vm1, %v8856_v51 }
 0x20a   : > { %v8845_v53 = vpop.permute.xlu1 %8844  ;;  %v8839_v54 = vpop.permute.xlu0 %8838 }
 0x20b   : > { %v8855_v57 = vsel %vm8854_vm14, %v8839_v54, %v8841_v50  ;;  %v8857_v62 = vsel %vm8854_vm14, %v8843_v49, %v8845_v53 }
 0x20c   : > { %10044 = vmatpush1.msk.msra.mxu0 %vm290_vm1, %v8855_v57 }
 0x20d   : > { %10045 = vmatmul.mubr.msk.f32.vlgmr.msra.gmra.mrb[0].mxu0 %vm286_vm2, %v10042_v55 }
 0x20e   : > { %v8849_v59 = vpop.permute.xlu1 %8848  ;;  %v8847_v60 = vpop.permute.xlu0 %8846  ;;  %9085 = vmatprep.mubr.f32.mxu0 %v10531_v0 }
 0x20f   : > { %v8858_v61 = vsel %vm8854_vm14, %v8845_v53, %v8847_v60  ;;  %v8859_v1 = vsel %vm8854_vm14, %v8847_v60, %v8849_v59 }
 0x210   : > { %10046 = vmatprep.subr.msk.mxu1 %vm290_vm1, %v8858_v61 }
 0x211   : > { %10047 = vmatpush1.msk.msra.mxu1 %vm290_vm1, %v8857_v62 }
 0x212   : > { %v8853_v9 = vpop.permute.xlu1 %8852  ;;  %v8851_v11 = vpop.permute.xlu0 %8850  ;;  %10255 = vmatprep.subr.mxu1 %v10531_v0  ;;  %10048 = vmatmul.mubr.msk.f32.vlgmr.msra.gmra.mrb[0].mxu1 %vm286_vm2, %v10042_v55 }
 0x213   : > { %v8860_v12 = vsel %vm8854_vm14, %v8849_v59, %v8851_v11  ;;  %v8861_v13 = vsel %vm8854_vm14, %v8851_v11, %v8853_v9  ;;  %10257 = vmatprep.mubr.msk.f32.mxu1 %vm10540_vm3, %v10531_v0 }
 0x214   : > { %10049 = vmatprep.subr.msk.mxu0 %vm290_vm1, %v8860_v12  ;;  %10256 = vmatpush3.msk.msra.mxu1 %vm290_vm1, %v8861_v13 }
 0x215   : > { %10050 = vmatpush1.msk.msra.mxu0 %vm290_vm1, %v8859_v1 }
 0x216   : > { %v9188_v6 = vpop.permute.xlu1 %9187  ;;  %v9186_v16 = vpop.permute.xlu0 %9185  ;;  %10051 = vmatmul.mubr.msk.f32.vlgmr.msra.gmra.mrb[2].mxu0 %vm286_vm2, %v10042_v55  ;;  %10258 = vmatmul.mubr.msk.f32.vlgmr.msra.gmra.mrb[2].mxu1 %vm286_vm2, %v10042_v55 }
 0x217   : > { %v9201_v17 = vsel %vm9199_vm15, %v9186_v16, %v9188_v6  ;;  %9288 = vmatprep.mubr.f32.mxu0 %v10531_v0  ;;  %9359 = vmatprep.mubr.f32.mxu1 %v10531_v0 }
 0x218   : > { %10055 = vmatprep.subr.msk.mxu0 %vm290_vm1, %v9201_v17 }
 0x21a   : > { %v9190_v18 = vpop.permute.xlu1 %9189  ;;  %v9184_v2 = vpop.permute.xlu0 %9183 }
 0x21b   : > { %v9200_v20 = vsel %vm9199_vm15, %v9184_v2, %v9186_v16  ;;  %v9202_v22 = vsel %vm9199_vm15, %v9188_v6, %v9190_v18 }
 0x21c   : > { %10056 = vmatpush1.msk.msra.mxu0 %vm290_vm1, %v9200_v20 }
 0x21d   : > { %10057 = vmatmul.mubr.msk.f32.vlgmr.msra.gmra.mrb[0].mxu0 %vm286_vm2, %v10054_v19 }
 0x21e   : > { %v9194_v21 = vpop.permute.xlu1 %9193  ;;  %v9192_v4 = vpop.permute.xlu0 %9191  ;;  %9430 = vmatprep.mubr.f32.mxu0 %v10531_v0 }
 0x21f   : > { %v9203_v5 = vsel %vm9199_vm15, %v9190_v18, %v9192_v4  ;;  %v9204_v25 = vsel %vm9199_vm15, %v9192_v4, %v9194_v21 }
 0x220   : > { %10058 = vmatprep.subr.msk.mxu1 %vm290_vm1, %v9203_v5 }
 0x221   : > { %10059 = vmatpush1.msk.msra.mxu1 %vm290_vm1, %v9202_v22 }
 0x222   : > { %v9198_v23 = vpop.permute.xlu1 %9197  ;;  %10060 = vmatmul.mubr.msk.f32.vlgmr.msra.gmra.mrb[0].mxu1 %vm286_vm2, %v10054_v19  ;;  %v9196_v24 = vpop.permute.xlu0 %9195  ;;  %10260 = vmatprep.subr.mxu1 %v10531_v0 }
 0x223   : > { %v9205_v7 = vsel %vm9199_vm15, %v9194_v21, %v9196_v24  ;;  %v9206_v8 = vsel %vm9199_vm15, %v9196_v24, %v9198_v23  ;;  %10262 = vmatprep.mubr.msk.f32.mxu1 %vm10540_vm3, %v10531_v0  ;;  %v9522_v0 = vsub.s32 1, %v9517_v56 }
 0x224   : > { %10061 = vmatprep.subr.msk.mxu0 %vm290_vm1, %v9205_v7  ;;  %10261 = vmatpush3.msk.msra.mxu1 %vm290_vm1, %v9206_v8 }
 0x225   : > { %10062 = vmatpush1.msk.msra.mxu0 %vm290_vm1, %v9204_v25  ;;  %v9523_v52 = vrot.slane %v9514_v27, %v9522_v0  ;;  %vm9599_vm1 = vcmask 7168  }
 0x226   : > { %10063 = vmatmul.mubr.msk.f32.vlgmr.msra.gmra.mrb[2].mxu0 %vm286_vm2, %v10054_v19  ;;  %10263 = vmatmul.mubr.msk.f32.vlgmr.msra.gmra.mrb[2].mxu1 %vm286_vm2, %v10054_v19 }
 0x2f0   : > { %v9290_v14 = vpop.f32.mrb[0].mxu0 }
 0x2f1   : > { %v9551_v10 = vmul.f32 %v9519_v28, %v9290_v14  ;;  %v9292_v30 = vpop.f32.mrb[1].mxu0 }
 0x2f2   : > { %v9552_v31 = vmul.f32 %v9523_v52, %v9292_v30 }
 0x2f3   : > { %v9601_v33 = vmul.f32 %v9551_v10, %v9551_v10 }
 0x2f4   : > { %v10072_v36 = vpack.c.bf16 %v9552_v31, %v9551_v10  ;;  %v9591_v37 = vadd.f32 %v9552_v31, %v9551_v10  ;;  %v9602_v38 = vmul.f32 %v9552_v31, %v9552_v31 }
 0x2f5   : > { %v9361_v39 = vpop.f32.mrb[0].mxu1 }
 0x2f6   : > { %9587 = vst [vmem:[%s11703_s16] sm:$0xff] %v10072_v36  ;;  %v9608_v40 = vadd.f32 %v9602_v38, %v9601_v33  ;;  %v9553_v41 = vmul.f32 %v9527_v32, %v9361_v39  ;;  %v9363_v42 = vpop.f32.mrb[1].mxu1 }
 0x2f7   : > { %v9554_v45 = vmul.f32 %v9531_v34, %v9363_v42 }
 0x2f8   : > { %v9592_v47 = vadd.f32 %v9591_v37, %v9553_v41  ;;  %v9603_v48 = vmul.f32 %v9553_v41, %v9553_v41 }
 0x2f9   : > { %v10073_v49 = vpack.c.bf16 %v9554_v45, %v9553_v41  ;;  %v9604_v50 = vmul.f32 %v9554_v45, %v9554_v45  ;;  %v9432_v51 = vpop.f32.mrb[2].mxu0  ;;  %v9503_v53 = vpop.f32.mrb[2].mxu1 }
 0x2fa   : > { %v9609_v54 = vadd.f32 %v9608_v40, %v9603_v48  ;;  %v9593_v55 = vadd.f32 %v9592_v47, %v9554_v45  ;;  %v9555_v57 = vmul.f32 %v9535_v43, %v9432_v51  ;;  %v9557_v59 = vmul.f32 %v9543_v44, %v9503_v53  ;;  %v9434_v60 = vpop.f32.mrb[3].mxu0  ;;  %v10264_v61 = vpop.f32.mrb[3].mxu1 }
 0x2fb   : > { %9588 = vst [vmem:[%s11703_s16 + $0x8] sm:$0xff] %v10073_v49  ;;  %v9556_v62 = vmul.f32 %v9539_v46, %v9434_v60 }
 0x2fc   : > { %v9610_v9 = vadd.f32 %v9609_v54, %v9604_v50  ;;  %v9594_v11 = vadd.f32 %v9593_v55, %v9555_v57  ;;  %v9605_v12 = vmul.f32 %v9555_v57, %v9555_v57  ;;  %v10075_v13 = vpack.c.bf16 %v9557_v59, %v9557_v59 }
 0x2fd   : > { %v10074_v1 = vpack.c.bf16 %v9556_v62, %v9555_v57  ;;  %v9606_v6 = vmul.f32 %v9556_v62, %v9556_v62  ;;  %v9607_v18 = vmul.f32 %v9557_v59, %v9557_v59 }
 0x2fe   : > { %v9611_v16 = vadd.f32 %v9610_v9, %v9605_v12  ;;  %9590 = vst [vmem:[%s11703_s16 + $0x18] sm:$0xf] %v10075_v13  ;;  %v9595_v17 = vadd.f32 %v9594_v11, %v9556_v62 }
 0x2ff   : > { %9589 = vst [vmem:[%s11703_s16 + $0x10] sm:$0xff] %v10074_v1 }
 0x300   : > { %v9596_v2 = vadd.f32 %v9595_v17, %v9557_v59  ;;  %v9612_v19 = vadd.f32 %v9611_v16, %v9606_v6 }
 0x302   : > { %9597 = vadd.xlane.f32.xlu0 %v9596_v2  ;;  %v9613_v20 = vadd.f32 %v9612_v19, %v9607_v18 }
 0x304   : > { %9614 = vadd.xlane.f32.xlu1 %v9613_v20 }
 0x38f   : > { %v9598_v21 = vpop.xlane.xlu0 %9597 }
 0x390   : > { %9600 = vst.msk [vmem:[%s241_s21] sm:$0xff] %vm9599_vm1, %v9598_v21 }
 0x391   : > { %v9615_v4 = vpop.xlane.xlu1 %9614 }
 0x392   : > { %9616 = vst.msk [vmem:[%s245_s25] sm:$0xff] %vm9599_vm1, %v9615_v4 }
 0x393 PF: > { %s16_s18 = sadd.s32 1, %s10529_s18  }
 0x394   : > { %p13_p4 = scmp.ge.s32.totalorder %s16_s18, 4  }
 0x396   :  { %15 = sbr.rel (!%p13_p4) target bundleno = 1 (0x1), region = 112 }

</bundles_post_ra>
